<compile_context>
chip_gen: v7x
topology: tpu7x:2x2x1
jax: 0.10.0
libtpu: 0.0.40
codegen_flags: <defaults>
</compile_context>

<pallas_src>
import jax
import jax.numpy as jnp
import numpy as np
from jax import lax
from jax.experimental import pallas as pl
from jax.experimental.pallas import tpu as pltpu

KERNEL_SIZE = 5
PAD = (KERNEL_SIZE - 1) // 2


def _round_up(v, m):
    return -(-v // m) * m


def init_params(key, n_sensors, output_channels, kernel_size=KERNEL_SIZE):
    keys = iter(jax.random.split(key, 2 * (len(output_channels) + 3)))
    convs = []
    cin = 1
    for cout in output_channels:
        w = 0.3 * jax.random.normal(next(keys), (cout, cin, kernel_size), jnp.float32)
        b = 0.1 * jax.random.normal(next(keys), (cout,), jnp.float32)
        convs.append((w, b))
        cin = cout
    len_flat = int(np.ceil(n_sensors / 2 ** len(output_channels))) * output_channels[-1]
    linears = []
    for din, dout in [(len_flat, 40), (40, 8), (8, 1)]:
        w = (1.0 / np.sqrt(din)) * jax.random.normal(next(keys), (dout, din), jnp.float32)
        b = 0.1 * jax.random.normal(next(keys), (dout,), jnp.float32)
        linears.append((w, b))
    return {"convs": convs, "linears": linears}


def pack_lidar_params(params, n_sensors):
    """Host-side repack of PyTorch-layout params into two packed f32 arrays.

    Per conv block, the circular conv is expressed as a dense block-circulant matrix in a
    position-major (L, C) feature layout; the even/odd max-pool column selections are folded in
    and the even/odd halves are row-stacked into ONE merged matrix (each half padded to a
    multiple of 8 rows).  The linear head follows; linear_3 (1x8) is stored transposed as an
    (8,1) column so the kernel can evaluate it on the VPU instead of the MXU.

    Returns a dict with:
      wpack      : (R, Cmax) f32 — row-stacked (8-row aligned) per-op weight matrices
      bpack      : (Bmax, n_ops) f32 — per-op bias column vectors
      offsets    : tuple of (row_offset, rows, cols) per op, in execution order
      split_rows : per conv block, the padded half-height r_pad used for the even/odd split
    """
    convs = [(np.asarray(w, np.float32), np.asarray(b, np.float32)) for (w, b) in params["convs"]]
    linears = [(np.asarray(w, np.float32), np.asarray(b, np.float32)) for (w, b) in params["linears"]]

    mats, biases, split_rows = [], [], []
    l_cur, c_cur = n_sensors, 1
    in_cols = n_sensors                     # current activation row count (features on sublanes)
    for (w, b) in convs:
        c_out, c_in, k = w.shape
        assert c_in == c_cur
        pad = (k - 1) // 2
        l_in, l_out = l_cur, (l_cur + 1) // 2
        f_in = l_in * c_in
        # Dense circular conv: y[l*c_out + co] = sum_fi m[fi, l*c_out + co] * x[fi]
        # (the += handles L < K, where several taps wrap onto the same source position).
        m = np.zeros((f_in, l_in * c_out), np.float32)
        for l in range(l_in):
            for kk in range(k):
                lp = (l + kk - pad) % l_in
                m[lp * c_in:(lp + 1) * c_in, l * c_out:(l + 1) * c_out] += w[:, :, kk].T
        r = l_out * c_out
        r_pad = _round_up(r, 8)
        wm = np.zeros((2 * r_pad, in_cols), np.float32)   # merged [even; odd], halves 8-aligned
        bm = np.zeros((2 * r_pad,), np.float32)
        for j in range(l_out):
            wm[j * c_out:(j + 1) * c_out, :f_in] = m[:, (2 * j) * c_out:(2 * j + 1) * c_out].T
            bm[j * c_out:(j + 1) * c_out] = b
            if 2 * j + 1 < l_in:  # ceil_mode tail: odd half rows stay all-zero (ReLU -> 0)
                wm[r_pad + j * c_out:r_pad + (j + 1) * c_out, :f_in] = \
                    m[:, (2 * j + 1) * c_out:(2 * j + 2) * c_out].T
                bm[r_pad + j * c_out:r_pad + (j + 1) * c_out] = b
        mats.append(wm)
        biases.append(bm)
        split_rows.append(r_pad)
        l_cur, c_cur = l_out, c_out
        in_cols = r_pad                      # activation rows stay padded (padding rows are 0)

    # Linear head.  Permute linear_1's input columns from PyTorch's channel-major (C, L)
    # Flatten order to our position-major (L, C) feature order, then pad to in_cols.
    (w1, b1), (w2, b2), (w3, b3) = linears
    len_flat = l_cur * c_cur
    assert w1.shape[1] == len_flat, (w1.shape, len_flat)
    w1p = w1.reshape(w1.shape[0], c_cur, l_cur).transpose(0, 2, 1).reshape(w1.shape[0], len_flat)
    w1f = np.zeros((w1.shape[0], in_cols), np.float32)
    w1f[:, :len_flat] = w1p
    mats += [w1f, w2]
    biases += [b1, b2]
    # linear_3 (1x8): store transposed as an (8,1) column -> VPU broadcast-mul + sublane reduce.
    mats.append(w3.T.copy())
    biases.append(b3)

    # Pack every matrix into one row-stacked array (rows padded to multiples of 8 so all static
    # slices are sublane-aligned); contraction widths are NOT padded to 128.
    max_cols = max(mt.shape[1] for mt in mats)
    offsets, blocks, row = [], [], 0
    for mt in mats:
        r, c = mt.shape
        r_pad = _round_up(r, 8)
        blk = np.zeros((r_pad, max_cols), np.float32)
        blk[:r, :c] = mt
        offsets.append((row, r, c))
        blocks.append(blk)
        row += r_pad
    wpack = np.concatenate(blocks, axis=0)

    b_rows = _round_up(max(bv.shape[0] for bv in biases), 8)
    bpack = np.zeros((b_rows, len(biases)), np.float32)
    for j, bv in enumerate(biases):
        bpack[:bv.shape[0], j] = bv

    return {
        "wpack": jnp.asarray(wpack),
        "bpack": jnp.asarray(bpack),
        "offsets": tuple(offsets),
        "split_rows": tuple(split_rows),
        "n_conv": len(convs),
        "n_sensors": n_sensors,
    }


def lidar_cnn_deep_forward(x, packed, *, b_tile=256, sub_slabs=2):
    """x: (B, 1, n_sensors) NCL input.  Returns (B, 1).

    b_tile: lanes per grid step (multiple of 128).  Guidance: v5e/v6e -> one big step
    (e.g. 512 for B~500); v7x -> keep grid length a multiple of 2 so both TensorCores get work.
    sub_slabs: number of independent lane sub-chains per step (hides MXU fill/drain latency).
    """
    B, cin, n = x.shape
    assert cin == 1, "Conv1d expects a single input channel"
    assert n == packed["n_sensors"]
    assert b_tile % 128 == 0, "b_tile must be a multiple of the 128-lane vreg width"
    if sub_slabs < 1 or b_tile % (128 * sub_slabs) != 0:
        sub_slabs = 1                          # keep every sub-slab lane-dense
    chunk = b_tile // sub_slabs

    wpack, bpack = packed["wpack"], packed["bpack"]
    offsets = packed["offsets"]
    split_rows = packed["split_rows"]
    n_conv = packed["n_conv"]

    b_pad = _round_up(B, b_tile)
    # Batch on lanes, feature positions on sublanes.
    xt = jnp.transpose(x[:, 0, :], (1, 0)).astype(jnp.float32)          # (n, B)
    if b_pad != B:
        xt = jnp.pad(xt, ((0, 0), (0, b_pad - B)))                      # (n, b_pad)

    def kernel(x_ref, w_ref, b_ref, out_ref):
        def affine(op, h):
            off, r, c = offsets[op]                       # static python ints
            w = w_ref[off:off + r, 0:c]                   # (r, c) slice of packed weights
            b = b_ref[0:r, op:op + 1]                     # (r, 1) bias, broadcast over lanes
            return jnp.dot(w, h, preferred_element_type=jnp.float32) + b

        def net(h):
            # Feature extractor: each block = circular conv + ReLU + maxpool(2, ceil_mode),
            # folded into ONE merged matmul + ReLU + even/odd max (ReLU before the max keeps
            # the ceil-mode all-zero odd tail correct).
            for li in range(n_conv):
                rp = split_rows[li]
                h2 = jnp.maximum(affine(li, h), 0.0)
                h = jnp.maximum(h2[0:rp, :], h2[rp:2 * rp, :])
            h = jnp.maximum(affine(n_conv + 0, h), 0.0)   # linear_1[0] + ReLU
            h = jnp.maximum(affine(n_conv + 1, h), 0.0)   # linear_1[2], then linear_2's ReLU
            # linear_2[1] (1x8) + final ReLU on the VPU: broadcast-mul + 8-row sublane reduce.
            off3, _, _ = offsets[n_conv + 2]
            w3 = w_ref[off3:off3 + 8, 0:1]                # (8, 1) weight column
            b3 = b_ref[0:1, (n_conv + 2):(n_conv + 3)]    # (1, 1) scalar bias
            return jnp.maximum(jnp.sum(w3 * h, axis=0, keepdims=True) + b3, 0.0)

        # Independent lane sub-slabs: data-independent layer chains the scheduler can
        # interleave into MXU fill/drain bubbles of this latency-bound chain.
        for ci in range(sub_slabs):
            lo, hi = ci * chunk, (ci + 1) * chunk
            out_ref[:, lo:hi] = net(x_ref[:, lo:hi])      # lane-dense (1, chunk) store

    out = pl.pallas_call(
        kernel,
        out_shape=jax.ShapeDtypeStruct((1, b_pad), jnp.float32),
        grid_spec=pltpu.PrefetchScalarGridSpec(
            num_scalar_prefetch=0,
            grid=(b_pad // b_tile,),
            in_specs=[
                pl.BlockSpec((n, b_tile), lambda i: (0, i)),
                pl.BlockSpec(tuple(wpack.shape), lambda i: (0, 0)),
                pl.BlockSpec(tuple(bpack.shape), lambda i: (0, 0)),
            ],
            out_specs=pl.BlockSpec((1, b_tile), lambda i: (0, i)),
        ),
        compiler_params=pltpu.CompilerParams(dimension_semantics=("parallel",)),
    )(xt, wpack, bpack)
    return out[0, :B].reshape(B, 1)


def reference_forward(x, params):
    # Pure-JAX reference mirroring the PyTorch module exactly (full f32 precision).
    h = x.astype(jnp.float32)
    for w, b in params["convs"]:
        L = h.shape[-1]
        hp = jnp.concatenate([h[..., L - PAD:], h, h[..., :PAD]], axis=-1)   # circular pad
        h = lax.conv_general_dilated(hp, w, window_strides=(1,), padding="VALID",
                                     dimension_numbers=("NCH", "OIH", "NCH"),
                                     precision=lax.Precision.HIGHEST)
        h = jnp.maximum(h + b[None, :, None], 0.0)
        B_, C_, Lc = h.shape
        lout = (Lc + 1) // 2
        if Lc % 2 == 1:
            h = jnp.concatenate([h, jnp.full((B_, C_, 1), -jnp.inf, h.dtype)], axis=-1)
        h = h.reshape(B_, C_, lout, 2).max(axis=-1)
    h = h.reshape(h.shape[0], -1)
    (w1, b1), (w2, b2), (w3, b3) = params["linears"]
    dot = lambda a, m: jnp.dot(a, m, precision=lax.Precision.HIGHEST)
    h = jnp.maximum(dot(h, w1.T) + b1, 0.0)
    h = dot(h, w2.T) + b2
    h = jnp.maximum(h, 0.0)
    h = jnp.maximum(dot(h, w3.T) + b3, 0.0)
    return h


if __name__ == "__main__":
    n_sensors = 16
    output_channels = [4, 8, 16, 16]
    batch = 8            # small smoke-test batch; not a multiple of b_tile -> exercises padding
    b_tile = 256         # lane-dense batch tile (single grid step for this small batch)

    key = jax.random.PRNGKey(0)
    kp, kx = jax.random.split(key)
    params = init_params(kp, n_sensors, output_channels)
    x = jax.random.normal(kx, (batch, 1, n_sensors), jnp.float32)

    packed = pack_lidar_params(params, n_sensors)
    y = jax.block_until_ready(lidar_cnn_deep_forward(x, packed, b_tile=b_tile, sub_slabs=2))
    y_ref = reference_forward(x, params)

    assert y.shape == (batch, 1), y.shape
    # Kernel matmuls run at default MXU precision (single-pass bf16, f32 accumulate).
    if not jnp.allclose(y, y_ref, rtol=5e-2, atol=5e-2):
        max_err = float(jnp.max(jnp.abs(y - y_ref)))
        raise AssertionError(f"kernel/reference mismatch, max abs err = {max_err}")
    print("KERNEL_OK")
</pallas_src>

<mosaic_0001>
module attributes {stable_mosaic.version = 11 : i64} {
  func.func @kernel(%arg0: i32, %arg1: memref<16x256xf32, #tpu.memory_space<vmem>>, %arg2: memref<280x40xf32, #tpu.memory_space<vmem>>, %arg3: memref<64x7xf32, #tpu.memory_space<vmem>>, %arg4: memref<1x256xf32, #tpu.memory_space<vmem>>) attributes {dimension_semantics = [#tpu.dimension_semantics<parallel>], iteration_bounds = array<i64: 1>, scalar_prefetch = 0 : i64, scratch_operands = 0 : i64, tpu.core_type = #tpu.core_type<tc>, window_params = [{transform_indices = @transform_0, window_bounds = array<i64: 16, 256>}, {pipeline_mode = #tpu.pipeline_mode<synchronous>, transform_indices = @transform_1, window_bounds = array<i64: 280, 40>}, {pipeline_mode = #tpu.pipeline_mode<synchronous>, transform_indices = @transform_2, window_bounds = array<i64: 64, 7>}, {transform_indices = @transform_3, window_bounds = array<i64: 1, 256>}]} {
    %c0 = arith.constant 0 : index
    %c0_0 = arith.constant 0 : index
    %0 = vector.load %arg1[%c0, %c0_0] : memref<16x256xf32, #tpu.memory_space<vmem>>, vector<16x128xf32>
    %c0_1 = arith.constant 0 : index
    %c0_2 = arith.constant 0 : index
    %1 = vector.load %arg2[%c0_1, %c0_2] : memref<280x40xf32, #tpu.memory_space<vmem>>, vector<64x16xf32>
    %c0_3 = arith.constant 0 : index
    %c0_4 = arith.constant 0 : index
    %2 = vector.load %arg3[%c0_3, %c0_4] : memref<64x7xf32, #tpu.memory_space<vmem>>, vector<64x1xf32>
    %cst = arith.constant dense<0.000000e+00> : vector<64x128xf32>
    %3 = tpu.matmul %1, %0, %cst {dimension_numbers = #tpu.dot_dimension_numbers<[1], [0], [0], [1], [0, 0, 1, 1], [], []>} : vector<64x16xf32>, vector<16x128xf32>, vector<64x128xf32> -> vector<64x128xf32>
    %4 = vector.broadcast %2 : vector<64x1xf32> to vector<64x128xf32>
    %5 = arith.addf %3, %4 : vector<64x128xf32>
    %cst_5 = arith.constant 0.000000e+00 : f32
    %6 = vector.broadcast %cst_5 : f32 to vector<64x128xf32>
    %7 = arith.maximumf %5, %6 : vector<64x128xf32>
    %8 = vector.extract_strided_slice %7 {offsets = [0, 0], sizes = [32, 128], strides = [1, 1]} : vector<64x128xf32> to vector<32x128xf32>
    %9 = vector.extract_strided_slice %7 {offsets = [32, 0], sizes = [32, 128], strides = [1, 1]} : vector<64x128xf32> to vector<32x128xf32>
    %10 = arith.maximumf %8, %9 : vector<32x128xf32>
    %c64 = arith.constant 64 : index
    %c0_6 = arith.constant 0 : index
    %11 = vector.load %arg2[%c64, %c0_6] : memref<280x40xf32, #tpu.memory_space<vmem>>, vector<64x32xf32>
    %c0_7 = arith.constant 0 : index
    %c1 = arith.constant 1 : index
    %12 = vector.load %arg3[%c0_7, %c1] : memref<64x7xf32, #tpu.memory_space<vmem>>, vector<64x1xf32>
    %cst_8 = arith.constant dense<0.000000e+00> : vector<64x128xf32>
    %13 = tpu.matmul %11, %10, %cst_8 {dimension_numbers = #tpu.dot_dimension_numbers<[1], [0], [0], [1], [0, 0, 1, 1], [], []>} : vector<64x32xf32>, vector<32x128xf32>, vector<64x128xf32> -> vector<64x128xf32>
    %14 = vector.broadcast %12 : vector<64x1xf32> to vector<64x128xf32>
    %15 = arith.addf %13, %14 : vector<64x128xf32>
    %cst_9 = arith.constant 0.000000e+00 : f32
    %16 = vector.broadcast %cst_9 : f32 to vector<64x128xf32>
    %17 = arith.maximumf %15, %16 : vector<64x128xf32>
    %18 = vector.extract_strided_slice %17 {offsets = [0, 0], sizes = [32, 128], strides = [1, 1]} : vector<64x128xf32> to vector<32x128xf32>
    %19 = vector.extract_strided_slice %17 {offsets = [32, 0], sizes = [32, 128], strides = [1, 1]} : vector<64x128xf32> to vector<32x128xf32>
    %20 = arith.maximumf %18, %19 : vector<32x128xf32>
    %c128 = arith.constant 128 : index
    %c0_10 = arith.constant 0 : index
    %21 = vector.load %arg2[%c128, %c0_10] : memref<280x40xf32, #tpu.memory_space<vmem>>, vector<64x32xf32>
    %c0_11 = arith.constant 0 : index
    %c2 = arith.constant 2 : index
    %22 = vector.load %arg3[%c0_11, %c2] : memref<64x7xf32, #tpu.memory_space<vmem>>, vector<64x1xf32>
    %cst_12 = arith.constant dense<0.000000e+00> : vector<64x128xf32>
    %23 = tpu.matmul %21, %20, %cst_12 {dimension_numbers = #tpu.dot_dimension_numbers<[1], [0], [0], [1], [0, 0, 1, 1], [], []>} : vector<64x32xf32>, vector<32x128xf32>, vector<64x128xf32> -> vector<64x128xf32>
    %24 = vector.broadcast %22 : vector<64x1xf32> to vector<64x128xf32>
    %25 = arith.addf %23, %24 : vector<64x128xf32>
    %cst_13 = arith.constant 0.000000e+00 : f32
    %26 = vector.broadcast %cst_13 : f32 to vector<64x128xf32>
    %27 = arith.maximumf %25, %26 : vector<64x128xf32>
    %28 = vector.extract_strided_slice %27 {offsets = [0, 0], sizes = [32, 128], strides = [1, 1]} : vector<64x128xf32> to vector<32x128xf32>
    %29 = vector.extract_strided_slice %27 {offsets = [32, 0], sizes = [32, 128], strides = [1, 1]} : vector<64x128xf32> to vector<32x128xf32>
    %30 = arith.maximumf %28, %29 : vector<32x128xf32>
    %c192 = arith.constant 192 : index
    %c0_14 = arith.constant 0 : index
    %31 = vector.load %arg2[%c192, %c0_14] : memref<280x40xf32, #tpu.memory_space<vmem>>, vector<32x32xf32>
    %c0_15 = arith.constant 0 : index
    %c3 = arith.constant 3 : index
    %32 = vector.load %arg3[%c0_15, %c3] : memref<64x7xf32, #tpu.memory_space<vmem>>, vector<32x1xf32>
    %cst_16 = arith.constant dense<0.000000e+00> : vector<32x128xf32>
    %33 = tpu.matmul %31, %30, %cst_16 {dimension_numbers = #tpu.dot_dimension_numbers<[1], [0], [0], [1], [0, 0, 1, 1], [], []>} : vector<32x32xf32>, vector<32x128xf32>, vector<32x128xf32> -> vector<32x128xf32>
    %34 = vector.broadcast %32 : vector<32x1xf32> to vector<32x128xf32>
    %35 = arith.addf %33, %34 : vector<32x128xf32>
    %cst_17 = arith.constant 0.000000e+00 : f32
    %36 = vector.broadcast %cst_17 : f32 to vector<32x128xf32>
    %37 = arith.maximumf %35, %36 : vector<32x128xf32>
    %38 = vector.extract_strided_slice %37 {offsets = [0, 0], sizes = [16, 128], strides = [1, 1]} : vector<32x128xf32> to vector<16x128xf32>
    %39 = vector.extract_strided_slice %37 {offsets = [16, 0], sizes = [16, 128], strides = [1, 1]} : vector<32x128xf32> to vector<16x128xf32>
    %40 = arith.maximumf %38, %39 : vector<16x128xf32>
    %c224 = arith.constant 224 : index
    %c0_18 = arith.constant 0 : index
    %41 = vector.load %arg2[%c224, %c0_18] : memref<280x40xf32, #tpu.memory_space<vmem>>, vector<40x16xf32>
    %c0_19 = arith.constant 0 : index
    %c4 = arith.constant 4 : index
    %42 = vector.load %arg3[%c0_19, %c4] : memref<64x7xf32, #tpu.memory_space<vmem>>, vector<40x1xf32>
    %cst_20 = arith.constant dense<0.000000e+00> : vector<40x128xf32>
    %43 = tpu.matmul %41, %40, %cst_20 {dimension_numbers = #tpu.dot_dimension_numbers<[1], [0], [0], [1], [0, 0, 1, 1], [], []>} : vector<40x16xf32>, vector<16x128xf32>, vector<40x128xf32> -> vector<40x128xf32>
    %44 = vector.broadcast %42 : vector<40x1xf32> to vector<40x128xf32>
    %45 = arith.addf %43, %44 : vector<40x128xf32>
    %cst_21 = arith.constant 0.000000e+00 : f32
    %46 = vector.broadcast %cst_21 : f32 to vector<40x128xf32>
    %47 = arith.maximumf %45, %46 : vector<40x128xf32>
    %c264 = arith.constant 264 : index
    %c0_22 = arith.constant 0 : index
    %48 = vector.load %arg2[%c264, %c0_22] : memref<280x40xf32, #tpu.memory_space<vmem>>, vector<8x40xf32>
    %c0_23 = arith.constant 0 : index
    %c5 = arith.constant 5 : index
    %49 = vector.load %arg3[%c0_23, %c5] : memref<64x7xf32, #tpu.memory_space<vmem>>, vector<8x1xf32>
    %cst_24 = arith.constant dense<0.000000e+00> : vector<8x128xf32>
    %50 = tpu.matmul %48, %47, %cst_24 {dimension_numbers = #tpu.dot_dimension_numbers<[1], [0], [0], [1], [0, 0, 1, 1], [], []>} : vector<8x40xf32>, vector<40x128xf32>, vector<8x128xf32> -> vector<8x128xf32>
    %51 = vector.broadcast %49 : vector<8x1xf32> to vector<8x128xf32>
    %52 = arith.addf %50, %51 : vector<8x128xf32>
    %cst_25 = arith.constant 0.000000e+00 : f32
    %53 = vector.broadcast %cst_25 : f32 to vector<8x128xf32>
    %54 = arith.maximumf %52, %53 : vector<8x128xf32>
    %c272 = arith.constant 272 : index
    %c0_26 = arith.constant 0 : index
    %55 = vector.load %arg2[%c272, %c0_26] : memref<280x40xf32, #tpu.memory_space<vmem>>, vector<8x1xf32>
    %c0_27 = arith.constant 0 : index
    %c6 = arith.constant 6 : index
    %56 = vector.load %arg3[%c0_27, %c6] : memref<64x7xf32, #tpu.memory_space<vmem>>, vector<1x1xf32>
    %57 = vector.broadcast %55 : vector<8x1xf32> to vector<8x128xf32>
    %58 = arith.mulf %57, %54 : vector<8x128xf32>
    %cst_28 = arith.constant dense<0.000000e+00> : vector<128xf32>
    %59 = vector.multi_reduction <add>, %58, %cst_28 [0] : vector<8x128xf32> to vector<128xf32>
    %60 = vector.shape_cast %59 : vector<128xf32> to vector<1x128xf32>
    %61 = vector.broadcast %56 : vector<1x1xf32> to vector<1x128xf32>
    %62 = arith.addf %60, %61 : vector<1x128xf32>
    %cst_29 = arith.constant 0.000000e+00 : f32
    %63 = vector.broadcast %cst_29 : f32 to vector<1x128xf32>
    %64 = arith.maximumf %62, %63 : vector<1x128xf32>
    %c0_30 = arith.constant 0 : index
    %c0_31 = arith.constant 0 : index
    %65 = vector.load %arg4[%c0_30, %c0_31] : memref<1x256xf32, #tpu.memory_space<vmem>>, vector<1x128xf32>
    tpu.vector_store %arg4[%c0_30, %c0_31], %64 {strides = array<i32>} : memref<1x256xf32, #tpu.memory_space<vmem>>, vector<1x128xf32>,
    %c0_32 = arith.constant 0 : index
    %c128_33 = arith.constant 128 : index
    %66 = vector.load %arg1[%c0_32, %c128_33] : memref<16x256xf32, #tpu.memory_space<vmem>>, vector<16x128xf32>
    %c0_34 = arith.constant 0 : index
    %c0_35 = arith.constant 0 : index
    %67 = vector.load %arg2[%c0_34, %c0_35] : memref<280x40xf32, #tpu.memory_space<vmem>>, vector<64x16xf32>
    %c0_36 = arith.constant 0 : index
    %c0_37 = arith.constant 0 : index
    %68 = vector.load %arg3[%c0_36, %c0_37] : memref<64x7xf32, #tpu.memory_space<vmem>>, vector<64x1xf32>
    %cst_38 = arith.constant dense<0.000000e+00> : vector<64x128xf32>
    %69 = tpu.matmul %67, %66, %cst_38 {dimension_numbers = #tpu.dot_dimension_numbers<[1], [0], [0], [1], [0, 0, 1, 1], [], []>} : vector<64x16xf32>, vector<16x128xf32>, vector<64x128xf32> -> vector<64x128xf32>
    %70 = vector.broadcast %68 : vector<64x1xf32> to vector<64x128xf32>
    %71 = arith.addf %69, %70 : vector<64x128xf32>
    %cst_39 = arith.constant 0.000000e+00 : f32
    %72 = vector.broadcast %cst_39 : f32 to vector<64x128xf32>
    %73 = arith.maximumf %71, %72 : vector<64x128xf32>
    %74 = vector.extract_strided_slice %73 {offsets = [0, 0], sizes = [32, 128], strides = [1, 1]} : vector<64x128xf32> to vector<32x128xf32>
    %75 = vector.extract_strided_slice %73 {offsets = [32, 0], sizes = [32, 128], strides = [1, 1]} : vector<64x128xf32> to vector<32x128xf32>
    %76 = arith.maximumf %74, %75 : vector<32x128xf32>
    %c64_40 = arith.constant 64 : index
    %c0_41 = arith.constant 0 : index
    %77 = vector.load %arg2[%c64_40, %c0_41] : memref<280x40xf32, #tpu.memory_space<vmem>>, vector<64x32xf32>
    %c0_42 = arith.constant 0 : index
    %c1_43 = arith.constant 1 : index
    %78 = vector.load %arg3[%c0_42, %c1_43] : memref<64x7xf32, #tpu.memory_space<vmem>>, vector<64x1xf32>
    %cst_44 = arith.constant dense<0.000000e+00> : vector<64x128xf32>
    %79 = tpu.matmul %77, %76, %cst_44 {dimension_numbers = #tpu.dot_dimension_numbers<[1], [0], [0], [1], [0, 0, 1, 1], [], []>} : vector<64x32xf32>, vector<32x128xf32>, vector<64x128xf32> -> vector<64x128xf32>
    %80 = vector.broadcast %78 : vector<64x1xf32> to vector<64x128xf32>
    %81 = arith.addf %79, %80 : vector<64x128xf32>
    %cst_45 = arith.constant 0.000000e+00 : f32
    %82 = vector.broadcast %cst_45 : f32 to vector<64x128xf32>
    %83 = arith.maximumf %81, %82 : vector<64x128xf32>
    %84 = vector.extract_strided_slice %83 {offsets = [0, 0], sizes = [32, 128], strides = [1, 1]} : vector<64x128xf32> to vector<32x128xf32>
    %85 = vector.extract_strided_slice %83 {offsets = [32, 0], sizes = [32, 128], strides = [1, 1]} : vector<64x128xf32> to vector<32x128xf32>
    %86 = arith.maximumf %84, %85 : vector<32x128xf32>
    %c128_46 = arith.constant 128 : index
    %c0_47 = arith.constant 0 : index
    %87 = vector.load %arg2[%c128_46, %c0_47] : memref<280x40xf32, #tpu.memory_space<vmem>>, vector<64x32xf32>
    %c0_48 = arith.constant 0 : index
    %c2_49 = arith.constant 2 : index
    %88 = vector.load %arg3[%c0_48, %c2_49] : memref<64x7xf32, #tpu.memory_space<vmem>>, vector<64x1xf32>
    %cst_50 = arith.constant dense<0.000000e+00> : vector<64x128xf32>
    %89 = tpu.matmul %87, %86, %cst_50 {dimension_numbers = #tpu.dot_dimension_numbers<[1], [0], [0], [1], [0, 0, 1, 1], [], []>} : vector<64x32xf32>, vector<32x128xf32>, vector<64x128xf32> -> vector<64x128xf32>
    %90 = vector.broadcast %88 : vector<64x1xf32> to vector<64x128xf32>
    %91 = arith.addf %89, %90 : vector<64x128xf32>
    %cst_51 = arith.constant 0.000000e+00 : f32
    %92 = vector.broadcast %cst_51 : f32 to vector<64x128xf32>
    %93 = arith.maximumf %91, %92 : vector<64x128xf32>
    %94 = vector.extract_strided_slice %93 {offsets = [0, 0], sizes = [32, 128], strides = [1, 1]} : vector<64x128xf32> to vector<32x128xf32>
    %95 = vector.extract_strided_slice %93 {offsets = [32, 0], sizes = [32, 128], strides = [1, 1]} : vector<64x128xf32> to vector<32x128xf32>
    %96 = arith.maximumf %94, %95 : vector<32x128xf32>
    %c192_52 = arith.constant 192 : index
    %c0_53 = arith.constant 0 : index
    %97 = vector.load %arg2[%c192_52, %c0_53] : memref<280x40xf32, #tpu.memory_space<vmem>>, vector<32x32xf32>
    %c0_54 = arith.constant 0 : index
    %c3_55 = arith.constant 3 : index
    %98 = vector.load %arg3[%c0_54, %c3_55] : memref<64x7xf32, #tpu.memory_space<vmem>>, vector<32x1xf32>
    %cst_56 = arith.constant dense<0.000000e+00> : vector<32x128xf32>
    %99 = tpu.matmul %97, %96, %cst_56 {dimension_numbers = #tpu.dot_dimension_numbers<[1], [0], [0], [1], [0, 0, 1, 1], [], []>} : vector<32x32xf32>, vector<32x128xf32>, vector<32x128xf32> -> vector<32x128xf32>
    %100 = vector.broadcast %98 : vector<32x1xf32> to vector<32x128xf32>
    %101 = arith.addf %99, %100 : vector<32x128xf32>
    %cst_57 = arith.constant 0.000000e+00 : f32
    %102 = vector.broadcast %cst_57 : f32 to vector<32x128xf32>
    %103 = arith.maximumf %101, %102 : vector<32x128xf32>
    %104 = vector.extract_strided_slice %103 {offsets = [0, 0], sizes = [16, 128], strides = [1, 1]} : vector<32x128xf32> to vector<16x128xf32>
    %105 = vector.extract_strided_slice %103 {offsets = [16, 0], sizes = [16, 128], strides = [1, 1]} : vector<32x128xf32> to vector<16x128xf32>
    %106 = arith.maximumf %104, %105 : vector<16x128xf32>
    %c224_58 = arith.constant 224 : index
    %c0_59 = arith.constant 0 : index
    %107 = vector.load %arg2[%c224_58, %c0_59] : memref<280x40xf32, #tpu.memory_space<vmem>>, vector<40x16xf32>
    %c0_60 = arith.constant 0 : index
    %c4_61 = arith.constant 4 : index
    %108 = vector.load %arg3[%c0_60, %c4_61] : memref<64x7xf32, #tpu.memory_space<vmem>>, vector<40x1xf32>
    %cst_62 = arith.constant dense<0.000000e+00> : vector<40x128xf32>
    %109 = tpu.matmul %107, %106, %cst_62 {dimension_numbers = #tpu.dot_dimension_numbers<[1], [0], [0], [1], [0, 0, 1, 1], [], []>} : vector<40x16xf32>, vector<16x128xf32>, vector<40x128xf32> -> vector<40x128xf32>
    %110 = vector.broadcast %108 : vector<40x1xf32> to vector<40x128xf32>
    %111 = arith.addf %109, %110 : vector<40x128xf32>
    %cst_63 = arith.constant 0.000000e+00 : f32
    %112 = vector.broadcast %cst_63 : f32 to vector<40x128xf32>
    %113 = arith.maximumf %111, %112 : vector<40x128xf32>
    %c264_64 = arith.constant 264 : index
    %c0_65 = arith.constant 0 : index
    %114 = vector.load %arg2[%c264_64, %c0_65] : memref<280x40xf32, #tpu.memory_space<vmem>>, vector<8x40xf32>
    %c0_66 = arith.constant 0 : index
    %c5_67 = arith.constant 5 : index
    %115 = vector.load %arg3[%c0_66, %c5_67] : memref<64x7xf32, #tpu.memory_space<vmem>>, vector<8x1xf32>
    %cst_68 = arith.constant dense<0.000000e+00> : vector<8x128xf32>
    %116 = tpu.matmul %114, %113, %cst_68 {dimension_numbers = #tpu.dot_dimension_numbers<[1], [0], [0], [1], [0, 0, 1, 1], [], []>} : vector<8x40xf32>, vector<40x128xf32>, vector<8x128xf32> -> vector<8x128xf32>
    %117 = vector.broadcast %115 : vector<8x1xf32> to vector<8x128xf32>
    %118 = arith.addf %116, %117 : vector<8x128xf32>
    %cst_69 = arith.constant 0.000000e+00 : f32
    %119 = vector.broadcast %cst_69 : f32 to vector<8x128xf32>
    %120 = arith.maximumf %118, %119 : vector<8x128xf32>
    %c272_70 = arith.constant 272 : index
    %c0_71 = arith.constant 0 : index
    %121 = vector.load %arg2[%c272_70, %c0_71] : memref<280x40xf32, #tpu.memory_space<vmem>>, vector<8x1xf32>
    %c0_72 = arith.constant 0 : index
    %c6_73 = arith.constant 6 : index
    %122 = vector.load %arg3[%c0_72, %c6_73] : memref<64x7xf32, #tpu.memory_space<vmem>>, vector<1x1xf32>
    %123 = vector.broadcast %121 : vector<8x1xf32> to vector<8x128xf32>
    %124 = arith.mulf %123, %120 : vector<8x128xf32>
    %cst_74 = arith.constant dense<0.000000e+00> : vector<128xf32>
    %125 = vector.multi_reduction <add>, %124, %cst_74 [0] : vector<8x128xf32> to vector<128xf32>
    %126 = vector.shape_cast %125 : vector<128xf32> to vector<1x128xf32>
    %127 = vector.broadcast %122 : vector<1x1xf32> to vector<1x128xf32>
    %128 = arith.addf %126, %127 : vector<1x128xf32>
    %cst_75 = arith.constant 0.000000e+00 : f32
    %129 = vector.broadcast %cst_75 : f32 to vector<1x128xf32>
    %130 = arith.maximumf %128, %129 : vector<1x128xf32>
    %c0_76 = arith.constant 0 : index
    %c128_77 = arith.constant 128 : index
    %131 = vector.load %arg4[%c0_76, %c128_77] : memref<1x256xf32, #tpu.memory_space<vmem>>, vector<1x128xf32>
    tpu.vector_store %arg4[%c0_76, %c128_77], %130 {strides = array<i32>} : memref<1x256xf32, #tpu.memory_space<vmem>>, vector<1x128xf32>,
    return
  }
  func.func @transform_0(%arg0: i32) -> (i32, i32) {
    %c0_i32 = arith.constant 0 : i32
    %c0_i32_0 = arith.constant 0 : i32
    return %c0_i32, %arg0 : i32, i32
  }
  func.func @transform_1(%arg0: i32) -> (i32, i32) {
    %c0_i32 = arith.constant 0 : i32
    %c0_i32_0 = arith.constant 0 : i32
    %c0_i32_1 = arith.constant 0 : i32
    return %c0_i32, %c0_i32_0 : i32, i32
  }
  func.func @transform_2(%arg0: i32) -> (i32, i32) {
    %c0_i32 = arith.constant 0 : i32
    %c0_i32_0 = arith.constant 0 : i32
    %c0_i32_1 = arith.constant 0 : i32
    return %c0_i32, %c0_i32_0 : i32, i32
  }
  func.func @transform_3(%arg0: i32) -> (i32, i32) {
    %c0_i32 = arith.constant 0 : i32
    %c0_i32_0 = arith.constant 0 : i32
    return %c0_i32, %arg0 : i32, i32
  }
}

</mosaic_0001>

<bundles_post_ra>
// kernel: tpu_custom_call.1
= control target key start
LH: loop header
LB: loop body
LE: loop exit
PB: predicated region body
PF: predicated region fallthrough
CT: control target
= control target key end

     0   :  { %vm73_vm0 = vcmask 130048   ;;  %v2434_v5 = vmov 0   ;;  %s3047_s0 = inlined_call_operand.vmem [shape: f32[16,256], index: 0, kind: input, shape index: {}]   ;;  %s3048_s1 = inlined_call_operand.vmem [shape: f32[280,40], index: 1, kind: input, shape index: {}]   ;;  %s3049_s2 = inlined_call_operand.vmem [shape: f32[64,7], index: 2, kind: input, shape index: {}]   ;;  %s3050_s3 = inlined_call_operand.hbm [shape: f32[1,256], index: 3, kind: output, shape index: {}]  }
   0x1   :  { %v15_v0 = vld [vmem:[%s3047_s0] sm:$0xff]  ;;  %v16_v1 = vld [vmem:[%s3047_s0 + $0x10] sm:$0xff]  ;;  %2386 = vset.pattern.permute.xlu1 %v2434_v5  ;;  %2385 = vset.pattern.permute.xlu0 %v2434_v5  ;;  %v2500_v8 = vld [vmem:[%s3048_s1 + $0x8] sm:$0xff] }
   0x2   :  { %v2474_v2 = vld [vmem:[%s3048_s1] sm:$0xff]  ;;  %v2298_v3 = vpack.c.bf16 %v16_v1, %v15_v0  ;;  %v2505_v9 = vld [vmem:[%s3048_s1 + $0x28] sm:$0xff]  ;;  %v2510_v10 = vld [vmem:[%s3048_s1 + $0x10] sm:$0xff] }
   0x3   :  { %2098 = vmatprep.mubr.msk.f32.mxu0 %vm73_vm0, %v2474_v2  ;;  %v2481_v4 = vld [vmem:[%s3048_s1 + $0x20] sm:$0xff]  ;;  %v2515_v11 = vld [vmem:[%s3048_s1 + $0x30] sm:$0xff]  ;;  %v2522_v12 = vld [vmem:[%s3049_s2 + $0x28] sm:$0xff] }
   0x4   :  { %2104 = vmatprep.mubr.msk.f32.mxu1 %vm73_vm0, %v2481_v4  ;;  %2299 = vmatprep.subr.bf16.mxu0 %v2298_v3  ;;  %v2490_v6 = vld [vmem:[%s3049_s2 + $0x20] sm:$0xff]  ;;  %v2527_v13 = vld [vmem:[%s3049_s2 + $0x8] sm:$0xff] }
   0x5   :  { %2372 = vmatprep.subr.bf16.mxu1 %v2298_v3  ;;  %v2495_v7 = vld [vmem:[%s3049_s2] sm:$0xff]  ;;  %2301 = vmatpush3.bf16.msra.mxu0 %v2298_v3 }
   0x6   :  { %2373 = vmatpush3.bf16.msra.mxu1 %v2298_v3  ;;  %55 = vperm.xlu1 %2386, %v2490_v6  }
   0x7   :  { %35 = vperm.xlu0 %2385, %v2495_v7  }
   0x8   :  { %8 = vsyncpa [#allocation3], 0  ;;  %2099 = vmatmul.mubr.msk.f32.vlgmr.msra.gmra.mrb[0].mxu0 %vm73_vm0, %v2500_v8  ;;  %v2540_v14 = vld [vmem:[%s3048_s1 + $0x18] sm:$0xff]  ;;  %v2557_v17 = vld [vmem:[%s3049_s2 + $0x10] sm:$0xff]  ;;  %vm255_vm1 = vcmask 261120   ;;  %v2435_v21 = vmov 1  }
   0x9   :  { %2105 = vmatmul.mubr.msk.f32.vlgmr.msra.gmra.mrb[0].mxu1 %vm73_vm0, %v2505_v9  ;;  %2101 = vmatprep.mubr.msk.f32.mxu0 %vm73_vm0, %v2510_v10  ;;  %v2545_v15 = vld [vmem:[%s3048_s1 + $0x38] sm:$0xff]  ;;  %v2573_v19 = vld [vmem:[%s3049_s2 + $0x30] sm:$0xff]  ;;  %v2580_v20 = vld [vmem:[%s3048_s1 + $0x40] sm:$0xff]  ;;  %vm2439_vm2 = vmmov 0   ;;  %vm861_vm3 = vcmask 326656  }
   0xa   :  { %2107 = vmatprep.mubr.msk.f32.mxu1 %vm73_vm0, %v2515_v11  ;;  %60 = vperm.xlu1 %2386, %v2522_v12   ;;  %v2552_v16 = vld [vmem:[%s3049_s2 + $0x18] sm:$0xff]  ;;  %v2597_v60 = vld [vmem:[%s3048_s1 + $0x48] sm:$0xff]  ;;  %v2602_v61 = vld [vmem:[%s3048_s1 + $0x50] sm:$0xff] }
   0xb   :  { %40 = vperm.xlu0 %2385, %v2527_v13   ;;  %v2568_v18 = vld [vmem:[%s3049_s2 + $0x38] sm:$0xff]  ;;  %v2616_v63 = vld [vmem:[%s3048_s1 + $0x60] sm:$0xff]  ;;  %v2625_v0 = vld [vmem:[%s3048_s1 + $0x68] sm:$0xff] }
   0xc   :  { %2102 = vmatmul.mubr.msk.f32.gmra.mrb[2].mxu0 %vm73_vm0, %v2540_v14  ;;  %v2611_v62 = vld [vmem:[%s3048_s1 + $0x58] sm:$0xff]  ;;  %v2630_v1 = vld [vmem:[%s3048_s1 + $0x70] sm:$0xff] }
   0xd   :  { %2108 = vmatmul.mubr.msk.f32.gmra.mrb[2].mxu1 %vm73_vm0, %v2545_v15  ;;  %v2639_v3 = vld [vmem:[%s3048_s1 + $0x78] sm:$0xff] }
   0xe   :  { %50 = vperm.xlu1 %2386, %v2552_v16   ;;  %2118 = vmatprep.mubr.msk.f32.mxu1 %vm255_vm1, %v2580_v20 }
   0xf   :  { %45 = vperm.xlu0 %2385, %v2557_v17  }
  0x12   :  { %70 = vperm.xlu1 %2386, %v2568_v18  }
  0x13   :  { %65 = vperm.xlu0 %2385, %v2573_v19  }
  0x16   :  { %2388 = vset.pattern.permute.xlu1 %v2435_v21 }
  0x17   :  { %2387 = vset.pattern.permute.xlu0 %v2435_v21  ;;  %228 = vperm.xlu1 %2388, %v2527_v13  }
  0x18   :  { %224 = vperm.xlu0 %2387, %v2495_v7  }
  0x1b   :  { %240 = vperm.xlu1 %2388, %v2490_v6  }
  0x1c   :  { %244 = vperm.xlu0 %2387, %v2522_v12  }
  0x1f   :  { %232 = vperm.xlu1 %2388, %v2557_v17  }
  0x20   :  { %236 = vperm.xlu0 %2387, %v2552_v16  }
  0x23   :  { %248 = vperm.xlu1 %2388, %v2573_v19  }
  0x24   :  { %252 = vperm.xlu0 %2387, %v2568_v18  }
  0x85   :  { %v56_v22 = vpop.permute.xlu1 %55 }
  0x86   :  { %v36_v23 = vpop.permute.xlu0 %35 }
  0x89   :  { %v61_v24 = vpop.permute.xlu1 %60 }
  0x8a   :  { %v41_v25 = vpop.permute.xlu0 %40 }
  0x8d   :  { %v51_v26 = vpop.permute.xlu1 %50 }
  0x8e   :  { %v46_v27 = vpop.permute.xlu0 %45 }
  0x91   :  { %v71_v36 = vpop.permute.xlu1 %70 }
  0x92   :  { %v66_v37 = vpop.permute.xlu0 %65 }
  0xdb   :  { %v2100_v28 = vpop.f32.mrb[0].mxu0 }
  0xdc   :  { %v2106_v29 = vpop.f32.mrb[0].mxu1  ;;  %v170_v30 = vadd.f32 %v2100_v28, %v41_v25  ;;  %v164_v32 = vpop.f32.mrb[1].mxu0 }
  0xdd   :  { %v190_v31 = vadd.f32 %v2106_v29, %v61_v24  ;;  %v184_v33 = vpop.f32.mrb[1].mxu1  ;;  %v165_v34 = vadd.f32 %v164_v32, %v36_v23  ;;  %v3053_v23 = vmov 2   ;;  %v225_v24 = vpop.permute.xlu0 %224 }
  0xde   :  { %v185_v35 = vadd.f32 %v184_v33, %v56_v22  ;;  %v204_v38 = vmax.f32 %v170_v30, 0.0  ;;  %v2646_v22 = vld [vmem:[%s3048_s1 + $0x80] sm:$0xff]  ;;  %2389 = vset.pattern.permute.xlu1 %v3053_v23  ;;  %2390 = vset.pattern.permute.xlu0 %v3053_v23  ;;  %v229_v25 = vpop.permute.xlu1 %228 }
  0xdf   :  { %v208_v39 = vmax.f32 %v190_v31, 0.0  ;;  %v203_v40 = vmax.f32 %v165_v34, 0.0  ;;  %v2103_v42 = vpop.f32.mrb[2].mxu0  ;;  %2138 = vmatprep.mubr.msk.f32.mxu0 %vm255_vm1, %v2646_v22  ;;  %406 = vperm.xlu1 %2389, %v2495_v7  }
  0xe0   :  { %v207_v41 = vmax.f32 %v185_v35, 0.0  ;;  %v2109_v43 = vpop.f32.mrb[2].mxu1  ;;  %v180_v45 = vadd.f32 %v2103_v42, %v51_v26  ;;  %v174_v47 = vpop.f32.mrb[3].mxu0  ;;  %410 = vperm.xlu0 %2390, %v2527_v13  }
  0xe1   :  { %v212_v44 = vmax.f32 %v204_v38, %v208_v39  ;;  %v200_v46 = vadd.f32 %v2109_v43, %v71_v36  ;;  %v194_v48 = vpop.f32.mrb[3].mxu1  ;;  %v175_v50 = vadd.f32 %v174_v47, %v46_v27  ;;  %v245_v26 = vpop.permute.xlu0 %244 }
  0xe2   :  { %v211_v49 = vmax.f32 %v203_v40, %v207_v41  ;;  %v195_v51 = vadd.f32 %v194_v48, %v66_v37  ;;  %v206_v52 = vmax.f32 %v180_v45, 0.0  ;;  %v241_v28 = vpop.permute.xlu1 %240 }
  0xe3   :  { %v210_v53 = vmax.f32 %v200_v46, 0.0  ;;  %v205_v54 = vmax.f32 %v175_v50, 0.0  ;;  %422 = vperm.xlu1 %2389, %v2490_v6  }
  0xe4   :  { %v209_v55 = vmax.f32 %v195_v51, 0.0  ;;  %v2302_v56 = vpack.c.bf16 %v212_v44, %v211_v49  ;;  %414 = vperm.xlu0 %2390, %v2557_v17  }
  0xe5   :  { %v214_v57 = vmax.f32 %v206_v52, %v210_v53  ;;  %v237_v32 = vpop.permute.xlu0 %236 }
  0xe6   :  { %v213_v58 = vmax.f32 %v205_v54, %v209_v55  ;;  %2303 = vmatprep.subr.bf16.mxu1 %v2302_v56  ;;  %v233_v33 = vpop.permute.xlu1 %232 }
  0xe7   :  { %2305 = vmatpush3.bf16.msra.mxu1 %v2302_v56  ;;  %426 = vperm.xlu1 %2389, %v2522_v12  }
  0xe8   :  { %v2306_v59 = vpack.c.bf16 %v214_v57, %v213_v58  ;;  %430 = vperm.xlu0 %2390, %v2573_v19  }
  0xe9   :  { %v253_v43 = vpop.permute.xlu0 %252 }
  0xea   :  { %2307 = vmatprep.subr.bf16.mxu1 %v2306_v59  ;;  %v249_v48 = vpop.permute.xlu1 %248 }
  0xeb   :  { %2309 = vmatpush3.bf16.msra.mxu1 %v2306_v59  ;;  %418 = vperm.xlu1 %2389, %v2552_v16  }
  0xee   :  { %2119 = vmatmul.mubr.msk.f32.vlgmr.msra.gmra.mrb[4].mxu1 %vm255_vm1, %v2597_v60 }
  0xef   :  { %2121 = vmatprep.mubr.msk.f32.mxu1 %vm255_vm1, %v2602_v61  ;;  %434 = vperm.xlu1 %2389, %v2568_v18  }
  0xf2   :  { %2122 = vmatmul.mubr.msk.f32.gmra.mrb[6].mxu1 %vm255_vm1, %v2611_v62 }
  0xf3   :  { %2124 = vmatprep.mubr.msk.f32.mxu1 %vm255_vm1, %v2616_v63 }
  0xf6   :  { %2125 = vmatmul.mubr.msk.f32.gmra.mrb[8].mxu1 %vm255_vm1, %v2625_v0 }
  0xf7   :  { %2127 = vmatprep.mubr.msk.f32.mxu1 %vm255_vm1, %v2630_v1 }
  0xfa   :  { %2128 = vmatmul.mubr.msk.f32.gmra.mrb[10].mxu1 %vm255_vm1, %v2639_v3 }
 0x1c1   :  { %v2120_v27 = vpop.f32.mrb[4].mxu1 }
 0x1c2   :  { %v346_v29 = vpop.f32.mrb[5].mxu1  ;;  %v352_v34 = vadd.f32 %v2120_v27, %v229_v25  ;;  %v2668_v27 = vld [vmem:[%s3048_s1 + $0x90] sm:$0xff] }
 0x1c3   :  { %v347_v35 = vadd.f32 %v346_v29, %v225_v24  ;;  %v2682_v29 = vld [vmem:[%s3048_s1 + $0xa0] sm:$0xff] }
 0x1c4   :  { %v386_v40 = vmax.f32 %v352_v34, 0.0  ;;  %v3051_v34 = vmov 3  }
 0x1c5   :  { %v2123_v30 = vpop.f32.mrb[6].mxu1  ;;  %v385_v44 = vmax.f32 %v347_v35, 0.0  ;;  %2392 = vset.pattern.permute.xlu1 %v3051_v34  ;;  %2391 = vset.pattern.permute.xlu0 %v3051_v34  ;;  %v407_v35 = vpop.permute.xlu1 %406 }
 0x1c6   :  { %v356_v31 = vpop.f32.mrb[7].mxu1  ;;  %v362_v41 = vadd.f32 %v2123_v30, %v237_v32  ;;  %v2691_v30 = vld [vmem:[%s3048_s1 + $0xa8] sm:$0xff]  ;;  %v2705_v32 = vld [vmem:[%s3048_s1 + $0xb8] sm:$0xff]  ;;  %593 = vperm.xlu1 %2392, %v2527_v13   ;;  %588 = vperm.xlu0 %2391, %v2495_v7  }
 0x1c7   :  { %v357_v45 = vadd.f32 %v356_v31, %v233_v33  ;;  %v2696_v31 = vld [vmem:[%s3048_s1 + $0xb0] sm:$0xff]  ;;  %v2712_v33 = vld [vmem:[%s3048_s1 + $0xc0] sm:$0xff] }
 0x1c8   :  { %v388_v54 = vmax.f32 %v362_v41, 0.0  ;;  %2158 = vmatprep.mubr.msk.f32.mxu1 %vm255_vm1, %v2712_v33 }
 0x1c9   :  { %v2126_v36 = vpop.f32.mrb[8].mxu1  ;;  %v387_v56 = vmax.f32 %v357_v45, 0.0 }
 0x1ca   :  { %v372_v37 = vadd.f32 %v2126_v36, %v245_v26  ;;  %v366_v38 = vpop.f32.mrb[9].mxu1  ;;  %v2663_v26 = vld [vmem:[%s3048_s1 + $0x88] sm:$0xff]  ;;  %598 = vperm.xlu1 %2392, %v2557_v17   ;;  %603 = vperm.xlu0 %2391, %v2552_v16   ;;  %v423_v36 = vpop.permute.xlu1 %422 }
 0x1cb   :  { %v367_v39 = vadd.f32 %v366_v38, %v241_v28  ;;  %v2677_v28 = vld [vmem:[%s3048_s1 + $0x98] sm:$0xff] }
 0x1cc   :  { %v390_v42 = vmax.f32 %v372_v37, 0.0 }
 0x1cd   :  { %v389_v46 = vmax.f32 %v367_v39, 0.0  ;;  %v2129_v47 = vpop.f32.mrb[10].mxu1  ;;  %v411_v39 = vpop.permute.xlu0 %410 }
 0x1ce   :  { %v394_v49 = vmax.f32 %v386_v40, %v390_v42  ;;  %v382_v50 = vadd.f32 %v2129_v47, %v253_v43  ;;  %v376_v51 = vpop.f32.mrb[11].mxu1  ;;  %v427_v37 = vpop.permute.xlu1 %426 }
 0x1cf   :  { %v393_v52 = vmax.f32 %v385_v44, %v389_v46  ;;  %v377_v53 = vadd.f32 %v376_v51, %v249_v48 }
 0x1d0   :  { %v392_v55 = vmax.f32 %v382_v50, 0.0 }
 0x1d1   :  { %v391_v57 = vmax.f32 %v377_v53, 0.0  ;;  %v2310_v58 = vpack.c.bf16 %v394_v49, %v393_v52  ;;  %v415_v45 = vpop.permute.xlu0 %414 }
 0x1d2   :  { %v396_v59 = vmax.f32 %v388_v54, %v392_v55  ;;  %v419_v43 = vpop.permute.xlu1 %418 }
 0x1d3   :  { %v395_v24 = vmax.f32 %v387_v56, %v391_v57  ;;  %2311 = vmatprep.subr.bf16.mxu0 %v2310_v58 }
 0x1d4   :  { %2313 = vmatpush3.bf16.msra.mxu0 %v2310_v58 }
 0x1d5   :  { %v2314_v25 = vpack.c.bf16 %v396_v59, %v395_v24  ;;  %v431_v59 = vpop.permute.xlu0 %430 }
 0x1d6   :  { %v435_v54 = vpop.permute.xlu1 %434 }
 0x1d7   :  { %2315 = vmatprep.subr.bf16.mxu0 %v2314_v25 }
 0x1d8   :  { %2317 = vmatpush3.bf16.msra.mxu0 %v2314_v25 }
 0x1db   :  { %2139 = vmatmul.mubr.msk.f32.vlgmr.msra.gmra.mrb[4].mxu0 %vm255_vm1, %v2663_v26 }
 0x1dc   :  { %2141 = vmatprep.mubr.msk.f32.mxu0 %vm255_vm1, %v2668_v27 }
 0x1df   :  { %2142 = vmatmul.mubr.msk.f32.gmra.mrb[6].mxu0 %vm255_vm1, %v2677_v28 }
 0x1e0   :  { %2144 = vmatprep.mubr.msk.f32.mxu0 %vm255_vm1, %v2682_v29 }
 0x1e3   :  { %2145 = vmatmul.mubr.msk.f32.gmra.mrb[8].mxu0 %vm255_vm1, %v2691_v30 }
 0x1e4   :  { %2147 = vmatprep.mubr.msk.f32.mxu0 %vm255_vm1, %v2696_v31 }
 0x1e7   :  { %2148 = vmatmul.mubr.msk.f32.gmra.mrb[10].mxu0 %vm255_vm1, %v2705_v32 }
 0x2ae   :  { %v2140_v38 = vpop.f32.mrb[4].mxu0 }
 0x2af   :  { %v527_v40 = vpop.f32.mrb[5].mxu0  ;;  %v533_v44 = vadd.f32 %v2140_v38, %v411_v39 }
 0x2b0   :  { %v528_v46 = vadd.f32 %v527_v40, %v407_v35 }
 0x2b1   :  { %v567_v51 = vmax.f32 %v533_v44, 0.0 }
 0x2b2   :  { %v2143_v41 = vpop.f32.mrb[6].mxu0  ;;  %v566_v55 = vmax.f32 %v528_v46, 0.0  ;;  %v2441_v46 = vmov 4  }
 0x2b3   :  { %v537_v42 = vpop.f32.mrb[7].mxu0  ;;  %v543_v52 = vadd.f32 %v2143_v41, %v419_v43  ;;  %v3057_v43 = vmov 0.0|0.0   ;;  %2393 = vset.pattern.permute.xlu1 %v2441_v46  ;;  %2394 = vset.pattern.permute.xlu0 %v2441_v46 }
 0x2b4   :  { %v538_v56 = vadd.f32 %v537_v42, %v415_v45  ;;  %v2725_v42 = vld [vmem:[%s3048_s1 + $0xc8] sm:$0xff]  ;;  %2329 = vmatprep.subr.bf16.mxu0 %v3057_v43  ;;  %v3055_v45 = vmov 0.0   ;;  %721 = vperm.xlu1 %2393, %v2495_v7  }
 0x2b5   :  { %v569_v39 = vmax.f32 %v543_v52, 0.0  ;;  %3068 = vst [vmem:[#allocation5_spill] sm:$0xff] %v2725_v42  ;;  %2193 = vmatprep.mubr.msk.f32.mxu0 %vm2439_vm2, %v3055_v45  ;;  %726 = vperm.xlu0 %2394, %v2527_v13  }
 0x2b6   :  { %v2146_v47 = vpop.f32.mrb[8].mxu0  ;;  %v568_v40 = vmax.f32 %v538_v56, 0.0 }
 0x2b7   :  { %v553_v48 = vadd.f32 %v2146_v47, %v427_v37  ;;  %v547_v49 = vpop.f32.mrb[9].mxu0 }
 0x2b8   :  { %v548_v50 = vadd.f32 %v547_v49, %v423_v36  ;;  %731 = vperm.xlu1 %2393, %v2557_v17  }
 0x2b9   :  { %v571_v53 = vmax.f32 %v553_v48, 0.0  ;;  %741 = vperm.xlu0 %2394, %v2490_v6   ;;  %v3071_v48 = vmov 2  }
 0x2ba   :  { %v570_v57 = vmax.f32 %v548_v50, 0.0  ;;  %v2149_v58 = vpop.f32.mrb[10].mxu0 }
 0x2bb   :  { %v575_v24 = vmax.f32 %v567_v51, %v571_v53  ;;  %v563_v25 = vadd.f32 %v2149_v58, %v435_v54  ;;  %v557_v34 = vpop.f32.mrb[11].mxu0 }
 0x2bc   :  { %v574_v23 = vmax.f32 %v566_v55, %v570_v57  ;;  %v558_v38 = vadd.f32 %v557_v34, %v431_v59  ;;  %v2730_v34 = vld [vmem:[%s3048_s1 + $0xd0] sm:$0xff]  ;;  %736 = vperm.xlu1 %2393, %v2552_v16  }
 0x2bd   :  { %v573_v35 = vmax.f32 %v563_v25, 0.0  ;;  %3069 = vst [vmem:[#allocation6_spill] sm:$0xff] %v2730_v34  ;;  %2396 = vset.pattern.permute.xlu0 %v2434_v5 }
 0x2be   :  { %v572_v37 = vmax.f32 %v558_v38, 0.0  ;;  %v2318_v47 = vpack.c.bf16 %v575_v24, %v574_v23  ;;  %v2739_v23 = vld [vmem:[%s3048_s1 + $0xd8] sm:$0xff]  ;;  %987 = vperm.xlu0 %2396, %v2527_v13   ;;  %v2807_v38 = vld [vmem:[%s3048_s1 + $0xe8] sm:$0xff] }
 0x2bf   :  { %v577_v36 = vmax.f32 %v569_v39, %v573_v35  ;;  %3070 = vst [vmem:[#allocation7_spill] sm:$0xff] %v2739_v23  ;;  %3074 = vst [vmem:[#allocation9_spill] sm:$0xff] %v2807_v38  ;;  %v2816_v39 = vld [vmem:[%s3048_s1 + $0xf0] sm:$0xff]  ;;  %v2825_v35 = vld [vmem:[%s3048_s1 + $0xf8] sm:$0xff] }
 0x2c0   :  { %v576_v44 = vmax.f32 %v568_v40, %v572_v37  ;;  %2319 = vmatprep.subr.bf16.mxu1 %v2318_v47  ;;  %2395 = vset.pattern.permute.xlu1 %v2434_v5  ;;  %3075 = vst [vmem:[#allocation10_spill] sm:$0xff] %v2816_v39  ;;  %3076 = vst [vmem:[#allocation11_spill] sm:$0xff] %v2825_v35  ;;  %v2834_v40 = vld [vmem:[%s3048_s1 + $0x100] sm:$0xff]  ;;  %v2442_v37 = vmov 5  }
 0x2c1   :  { %2321 = vmatpush3.bf16.msra.mxu1 %v2318_v47  ;;  %982 = vperm.xlu1 %2395, %v2495_v7   ;;  %3077 = vst [vmem:[#allocation12_spill] sm:$0xff] %v2834_v40  ;;  %v936_v47 = vld [vmem:[%s3048_s1 + $0x110] sm:$0xff] }
 0x2c2   :  { %v2322_v41 = vpack.c.bf16 %v577_v36, %v576_v44  ;;  %992 = vperm.xlu0 %2396, %v2557_v17   ;;  %v937_v36 = vld [vmem:[%s3049_s2] sm:$0x1]  ;;  %v2443_v44 = vmov 6  }
 0x2c4   :  { %2323 = vmatprep.subr.bf16.mxu1 %v2322_v41 }
 0x2c5   :  { %2325 = vmatpush3.bf16.msra.mxu1 %v2322_v41  ;;  %1002 = vperm.xlu1 %2395, %v2490_v6  }
 0x2c6   :  { %2326 = vmatprep.subr.bf16.mxu1 %v3057_v43  ;;  %1012 = vperm.xlu0 %2396, %v2573_v19  }
 0x2c8   :  { %2159 = vmatmul.mubr.msk.f32.vlgmr.msra.gmra.mrb[12].mxu1 %vm255_vm1, %v2725_v42 }
 0x2c9   :  { %2161 = vmatprep.mubr.msk.f32.mxu1 %vm255_vm1, %v2730_v34  ;;  %1007 = vperm.xlu1 %2395, %v2522_v12  }
 0x2ca   :  { %2397 = vset.pattern.permute.xlu0 %v2435_v21 }
 0x2cb   :  { %1170 = vperm.xlu0 %2397, %v2495_v7  }
 0x2cc   :  { %2162 = vmatmul.mubr.msk.f32.gmra.mrb[14].mxu1 %vm255_vm1, %v2739_v23 }
 0x2cd   :  { %2168 = vmatprep.mubr.msk.f32.mxu1 %vm2439_vm2, %v3055_v45  ;;  %997 = vperm.xlu1 %2395, %v2552_v16  }
 0x2cf   :  { %1190 = vperm.xlu0 %2397, %v2522_v12  }
 0x2d1   :  { %1017 = vperm.xlu1 %2395, %v2568_v18  }
 0x2d3   :  { %1182 = vperm.xlu0 %2397, %v2552_v16  }
 0x2d5   :  { %2398 = vset.pattern.permute.xlu1 %v2435_v21  ;;  %v3072_v21 = vmov 3  }
 0x2d6   :  { %1174 = vperm.xlu1 %2398, %v2527_v13  }
 0x2d7   :  { %1198 = vperm.xlu0 %2397, %v2568_v18  }
 0x2da   :  { %1186 = vperm.xlu1 %2398, %v2490_v6  }
 0x2db   :  { %2400 = vset.pattern.permute.xlu0 %v3071_v48 }
 0x2dc   :  { %1355 = vperm.xlu0 %2400, %v2527_v13  }
 0x2de   :  { %1178 = vperm.xlu1 %2398, %v2557_v17  }
 0x2e0   :  { %1359 = vperm.xlu0 %2400, %v2557_v17  }
 0x2e2   :  { %1194 = vperm.xlu1 %2398, %v2573_v19  }
 0x2e4   :  { %1375 = vperm.xlu0 %2400, %v2573_v19   ;;  %v594_v19 = vpop.permute.xlu1 %593 }
 0x2e6   :  { %2399 = vset.pattern.permute.xlu1 %v3071_v48 }
 0x2e7   :  { %1351 = vperm.xlu1 %2399, %v2495_v7  }
 0x2e8   :  { %2401 = vset.pattern.permute.xlu0 %v3072_v21  ;;  %v599_v53 = vpop.permute.xlu1 %598 }
 0x2e9   :  { %1533 = vperm.xlu0 %2401, %v2495_v7  }
 0x2eb   :  { %1367 = vperm.xlu1 %2399, %v2490_v6  }
 0x2ed   :  { %1548 = vperm.xlu0 %2401, %v2552_v16  }
 0x2ef   :  { %1371 = vperm.xlu1 %2399, %v2522_v12   ;;  %v589_v12 = vpop.permute.xlu0 %588 }
 0x2f1   :  { %2404 = vset.pattern.permute.xlu0 %v2441_v46 }
 0x2f2   :  { %1671 = vperm.xlu0 %2404, %v2527_v13  }
 0x2f3   :  { %1363 = vperm.xlu1 %2399, %v2552_v16   ;;  %v604_v51 = vpop.permute.xlu0 %603 }
 0x2f6   :  { %1686 = vperm.xlu0 %2404, %v2490_v6  }
 0x2f7   :  { %1379 = vperm.xlu1 %2399, %v2568_v18  }
 0x2fa   :  { %2406 = vset.pattern.permute.xlu0 %v2442_v37 }
 0x2fb   :  { %2402 = vset.pattern.permute.xlu1 %v3072_v21  ;;  %1803 = vperm.xlu0 %2406, %v2495_v7  }
 0x2fc   :  { %1538 = vperm.xlu1 %2402, %v2527_v13  }
 0x2ff   :  { %2408 = vset.pattern.permute.xlu0 %v2443_v44 }
 0x300   :  { %1543 = vperm.xlu1 %2402, %v2557_v17   ;;  %952 = vperm.xlu0 %2408, %v937_v36  }
 0x304   :  { %2403 = vset.pattern.permute.xlu1 %v2441_v46 }
 0x305   :  { %1666 = vperm.xlu1 %2403, %v2495_v7  }
 0x309   :  { %1676 = vperm.xlu1 %2403, %v2557_v17  }
 0x30d   :  { %1681 = vperm.xlu1 %2403, %v2552_v16   ;;  %v2798_v16 = vld [vmem:[%s3048_s1 + $0xe0] sm:$0xff] }
 0x30e   :  { %3073 = vst [vmem:[#allocation8_spill] sm:$0xff] %v2798_v16 }
 0x311   :  { %2405 = vset.pattern.permute.xlu1 %v2442_v37  ;;  %v962_v37 = vld [vmem:[%s3047_s0 + $0x8] sm:$0xff] }
 0x312   :  { %858 = vperm.xlu1 %2405, %v2495_v7  }
 0x316   :  { %2407 = vset.pattern.permute.xlu1 %v2434_v5 }
 0x317   :  { %940 = vperm.xlu1 %2407, %v936_v47  }
 0x31b   :  { %1884 = vperm.xlu1 %2407, %v936_v47   ;;  %v963_v47 = vld [vmem:[%s3047_s0 + $0x18] sm:$0xff] }
 0x31c   :  { %v2335_v36 = vpack.c.bf16 %v963_v47, %v962_v37 }
 0x31f   :  { %2409 = vset.pattern.permute.xlu1 %v2443_v44 }
 0x334   :  { %v727_v7 = vpop.permute.xlu0 %726 }
 0x39b   :  { %v2160_v49 = vpop.f32.mrb[12].mxu1 }
 0x39c   :  { %v684_v50 = vpop.f32.mrb[13].mxu1  ;;  %v690_v6 = vadd.f32 %v2160_v49, %v594_v19 }
 0x39d   :  { %v685_v18 = vadd.f32 %v684_v50, %v589_v12 }
 0x39e   :  { %v704_v56 = vmax.f32 %v690_v6, 0.0 }
 0x39f   :  { %v2163_v52 = vpop.f32.mrb[14].mxu1  ;;  %v703_v58 = vmax.f32 %v685_v18, 0.0 }
 0x3a0   :  { %v700_v54 = vadd.f32 %v2163_v52, %v604_v51  ;;  %v694_v13 = vpop.f32.mrb[15].mxu1 }
 0x3a1   :  { %v695_v55 = vadd.f32 %v694_v13, %v599_v53 }
 0x3a2   :  { %v706_v57 = vmax.f32 %v700_v54, 0.0 }
 0x3a3   :  { %v705_v59 = vmax.f32 %v695_v55, 0.0 }
 0x3a4   :  { %v708_v24 = vmax.f32 %v704_v56, %v706_v57 }
 0x3a5   :  { %v707_v17 = vmax.f32 %v703_v58, %v705_v59  ;;  %v742_v58 = vpop.permute.xlu0 %741 }
 0x3a7   :  { %v2327_v25 = vpack.c.bf16 %v708_v24, %v707_v17 }
 0x3a9   :  { %2328 = vmatpush3.bf16.msra.mxu1 %v2327_v25 }
 0x3ac   :  { %2169 = vmatmul.mubr.msk.f32.vlgmr.msra.gmra.mrb[16].mxu1 %vm73_vm0, %v2798_v16 }
 0x3ad   :  { %2171 = vmatprep.mubr.msk.f32.mxu1 %vm2439_vm2, %v3055_v45 }
 0x3b0   :  { %2172 = vmatmul.mubr.msk.f32.gmra.mrb[18].mxu1 %vm73_vm0, %v2807_v38 }
 0x3b1   :  { %2174 = vmatprep.mubr.msk.f32.mxu1 %vm2439_vm2, %v3055_v45 }
 0x3b4   :  { %2175 = vmatmul.mubr.msk.f32.gmra.mrb[20].mxu1 %vm73_vm0, %v2816_v39 }
 0x3b5   :  { %2177 = vmatprep.mubr.msk.f32.mxu1 %vm2439_vm2, %v3055_v45 }
 0x3b8   :  { %2178 = vmatmul.mubr.msk.f32.gmra.mrb[22].mxu1 %vm73_vm0, %v2825_v35 }
 0x3b9   :  { %2180 = vmatprep.mubr.msk.f32.mxu1 %vm2439_vm2, %v3055_v45 }
 0x3bc   :  { %2181 = vmatmul.mubr.msk.f32.gmra.mrb[24].mxu1 %vm73_vm0, %v2834_v40 }
 0x3bd   :  { %2220 = vmatprep.mubr.msk.f32.mxu1 %vm255_vm1, %v2580_v20  ;;  %v722_v20 = vpop.permute.xlu1 %721 }
 0x3c1   :  { %v732_v49 = vpop.permute.xlu1 %731 }
 0x3c5   :  { %v737_v53 = vpop.permute.xlu1 %736 }
 0x47f   :  { %v825_v41 = vpop.f32.mrb[16].mxu1 }
 0x480   :  { %v2170_v46 = vpop.f32.mrb[17].mxu1  ;;  %v826_v48 = vadd.f32 %v825_v41, %v722_v20  ;;  %v2860_v20 = vld [vmem:[%s3048_s1 + $0x108] sm:$0xff] }
 0x481   :  { %3078 = vst [vmem:[#allocation13_spill] sm:$0xff] %v2860_v20 }
 0x482   :  { %v849_v50 = vmax.f32 %v826_v48, 0.0 }
 0x483   :  { %v830_v21 = vpop.f32.mrb[18].mxu1 }
 0x484   :  { %v831_v12 = vadd.f32 %v830_v21, %v727_v7  ;;  %v2173_v19 = vpop.f32.mrb[19].mxu1 }
 0x486   :  { %v850_v6 = vmax.f32 %v831_v12, 0.0 }
 0x487   :  { %v835_v51 = vpop.f32.mrb[20].mxu1 }
 0x488   :  { %v2330_v18 = vpack.c.bf16 %v850_v6, %v849_v50  ;;  %v2176_v5 = vpop.f32.mrb[21].mxu1  ;;  %v836_v52 = vadd.f32 %v835_v51, %v732_v49 }
 0x48a   :  { %2331 = vmatpush3.bf16.msra.mxu0 %v2330_v18  ;;  %v851_v56 = vmax.f32 %v836_v52, 0.0 }
 0x48b   :  { %v840_v54 = vpop.f32.mrb[22].mxu1  ;;  %2332 = vmatprep.subr.bf16.mxu0 %v3057_v43 }
 0x48c   :  { %v841_v13 = vadd.f32 %v840_v54, %v737_v53  ;;  %v2179_v55 = vpop.f32.mrb[23].mxu1 }
 0x48e   :  { %v852_v57 = vmax.f32 %v841_v13, 0.0 }
 0x48f   :  { %v845_v59 = vpop.f32.mrb[24].mxu1 }
 0x490   :  { %v2333_v24 = vpack.c.bf16 %v852_v57, %v851_v56  ;;  %v846_v17 = vadd.f32 %v845_v59, %v742_v58  ;;  %v2182_v25 = vpop.f32.mrb[25].mxu1 }
 0x492   :  { %2334 = vmatpush3.bf16.msra.mxu0 %v2333_v24  ;;  %v853_v44 = vmax.f32 %v846_v17, 0.0 }
 0x493   :  { %2191 = vmatprep.subr.mxu0 %v3055_v45 }
 0x496   :  { %2192 = vmatpush3.msra.mxu0 %v853_v44 }
 0x497   :  { %2194 = vmatmul.mubr.msk.f32.vlgmr.msra.gmra.mrb[12].mxu0 %vm861_vm3, %v2860_v20  ;;  %2336 = vmatprep.subr.bf16.mxu0 %v2335_v36 }
 0x498   :  { %2338 = vmatpush3.bf16.msra.mxu0 %v2335_v36  ;;  %2200 = vmatprep.mubr.msk.f32.mxu0 %vm73_vm0, %v2474_v2  ;;  %v983_v2 = vpop.permute.xlu1 %982 }
 0x49b   :  { %2201 = vmatmul.mubr.msk.f32.vlgmr.msra.gmra.mrb[14].mxu0 %vm73_vm0, %v2500_v8 }
 0x49c   :  { %2203 = vmatprep.mubr.msk.f32.mxu0 %vm73_vm0, %v2510_v10  ;;  %v1003_v8 = vpop.permute.xlu1 %1002 }
 0x49f   :  { %2204 = vmatmul.mubr.msk.f32.gmra.mrb[16].mxu0 %vm73_vm0, %v2540_v14 }
 0x4a0   :  { %2206 = vmatprep.mubr.msk.f32.mxu0 %vm73_vm0, %v2481_v4  ;;  %v1008_v10 = vpop.permute.xlu1 %1007 }
 0x4a3   :  { %2207 = vmatmul.mubr.msk.f32.gmra.mrb[18].mxu0 %vm73_vm0, %v2505_v9  ;;  %v988_v9 = vpop.permute.xlu0 %987 }
 0x4a4   :  { %2209 = vmatprep.mubr.msk.f32.mxu0 %vm73_vm0, %v2515_v11  ;;  %v998_v41 = vpop.permute.xlu1 %997 }
 0x4a7   :  { %2210 = vmatmul.mubr.msk.f32.gmra.mrb[20].mxu0 %vm73_vm0, %v2545_v15  ;;  %v993_v11 = vpop.permute.xlu0 %992 }
 0x4a8   :  { %2240 = vmatprep.mubr.msk.f32.mxu0 %vm255_vm1, %v2646_v22  ;;  %v1018_v14 = vpop.permute.xlu1 %1017 }
 0x4ab   :  { %v1013_v15 = vpop.permute.xlu0 %1012 }
 0x4ac   :  { %v2882_v46 = vpop.permute.xlu1 %1174 }
 0x4af   :  { %v2894_v22 = vpop.permute.xlu0 %1170 }
 0x4b0   :  { %v2884_v4 = vpop.permute.xlu1 %1186 }
 0x4b3   :  { %v2898_v49 = vpop.permute.xlu0 %1190 }
 0x4b4   :  { %v2886_v7 = vpop.permute.xlu1 %1178 }
 0x4b7   :  { %v2902_v6 = vpop.permute.xlu0 %1182 }
 0x4b8   :  { %v2888_v48 = vpop.permute.xlu1 %1194 }
 0x4bb   :  { %v2906_v18 = vpop.permute.xlu0 %1198 }
 0x4bc   :  { %v2890_v21 = vpop.permute.xlu1 %1351 }
 0x4bf   :  { %v2910_v52 = vpop.permute.xlu0 %1355 }
 0x4c0   :  { %v2892_v12 = vpop.permute.xlu1 %1367 }
 0x4c3   :  { %v2914_v54 = vpop.permute.xlu0 %1359 }
 0x4c4   :  { %v2896_v19 = vpop.permute.xlu1 %1371 }
 0x4c7   :  { %v2918_v55 = vpop.permute.xlu0 %1375 }
 0x4c8   :  { %v2900_v50 = vpop.permute.xlu1 %1363  ;;  %3082 = vst [vmem:[#allocation17_spill] sm:$0xff] %v2918_v55 }
 0x4cb   :  { %v2922_v57 = vpop.permute.xlu0 %1533 }
 0x4cc   :  { %v2904_v51 = vpop.permute.xlu1 %1379  ;;  %3084 = vst [vmem:[#allocation19_spill] sm:$0xff] %v2922_v57 }
 0x4cf   :  { %v2926_v59 = vpop.permute.xlu0 %1548 }
 0x4d0   :  { %v2908_v5 = vpop.permute.xlu1 %1538  ;;  %3086 = vst [vmem:[#allocation21_spill] sm:$0xff] %v2926_v59 }
 0x4d1   :  { %3079 = vst [vmem:[#allocation14_spill] sm:$0xff] %v2908_v5 }
 0x4d3   :  { %v2928_v17 = vpop.permute.xlu0 %1671 }
 0x4d4   :  { %v2912_v53 = vpop.permute.xlu1 %1543  ;;  %3087 = vst [vmem:[#allocation22_spill] sm:$0xff] %v2928_v17 }
 0x4d5   :  { %3080 = vst [vmem:[#allocation15_spill] sm:$0xff] %v2912_v53 }
 0x4d7   :  { %v2930_v43 = vpop.permute.xlu0 %1686 }
 0x4d8   :  { %v2916_v13 = vpop.permute.xlu1 %1666  ;;  %3088 = vst [vmem:[#allocation23_spill] sm:$0xff] %v2930_v43 }
 0x4d9   :  { %3081 = vst [vmem:[#allocation16_spill] sm:$0xff] %v2916_v13 }
 0x4dc   :  { %v2920_v56 = vpop.permute.xlu1 %1676 }
 0x4dd   :  { %3083 = vst [vmem:[#allocation18_spill] sm:$0xff] %v2920_v56 }
 0x4e0   :  { %v2924_v58 = vpop.permute.xlu1 %1681 }
 0x4e1   :  { %3085 = vst [vmem:[#allocation20_spill] sm:$0xff] %v2924_v58  ;;  %v2932_v58 = vpop.permute.xlu0 %1803 }
 0x4e2   :  { %3089 = vst [vmem:[#allocation24_spill] sm:$0xff] %v2932_v58 }
 0x4e4   :  { %v859_v24 = vpop.permute.xlu1 %858 }
 0x4e8   :  { %v941_v36 = vpop.permute.xlu1 %940 }
 0x56a   :  { %v931_v25 = vpop.f32.mrb[12].mxu0 }
 0x56b   :  { %v932_v37 = vadd.f32 %v931_v25, %v859_v24  ;;  %v2195_v47 = vpop.f32.mrb[13].mxu0 }
 0x56d   :  { %v935_v44 = vmax.f32 %v932_v37, 0.0 }
 0x56e   :  { %v2202_v45 = vpop.f32.mrb[14].mxu0 }
 0x56f   :  { %v943_v20 = vmul.f32 %v941_v36, %v935_v44  ;;  %v1110_v13 = vpop.f32.mrb[15].mxu0  ;;  %v1116_v16 = vadd.f32 %v2202_v45, %v988_v9 }
 0x570   :  { %v1111_v53 = vadd.f32 %v1110_v13, %v983_v2 }
 0x571   :  { %v944_v56 = vrot.slane %v943_v20, 4  ;;  %v1150_v37 = vmax.f32 %v1116_v16, 0.0 }
 0x572   :  { %v2205_v40 = vpop.f32.mrb[16].mxu0  ;;  %v1149_v36 = vmax.f32 %v1111_v53, 0.0 }
 0x573   :  { %v945_v35 = vadd.f32 %v944_v56, %v943_v20  ;;  %v1120_v39 = vpop.f32.mrb[17].mxu0  ;;  %v1126_v57 = vadd.f32 %v2205_v40, %v998_v41  ;;  %v957_v20 = vlaneseq  ;;  %v953_v56 = vpop.permute.xlu0 %952 }
 0x574   :  { %v1121_v44 = vadd.f32 %v1120_v39, %v993_v11 }
 0x575   :  { %v946_v38 = vrot.slane %v945_v35, 2  ;;  %vm2934_vm4 = vcmp.lt.s32.totalorder %v957_v20, 128 }
 0x576   :  { %v2208_v17 = vpop.f32.mrb[18].mxu0 }
 0x577   :  { %v1136_v59 = vadd.f32 %v2208_v17, %v1008_v10  ;;  %v1130_v24 = vpop.f32.mrb[19].mxu0  ;;  %v947_v25 = vadd.f32 %v946_v38, %v945_v35  ;;  %v1152_v10 = vmax.f32 %v1126_v57, 0.0  ;;  %v1151_v35 = vmax.f32 %v1121_v44, 0.0 }
 0x578   :  { %v1131_v47 = vadd.f32 %v1130_v24, %v1003_v8 }
 0x579   :  { %v1154_v5 = vmax.f32 %v1136_v59, 0.0  ;;  %v948_v43 = vrot.slane %v947_v25, 1 }
 0x57a   :  { %v1153_v23 = vmax.f32 %v1131_v47, 0.0  ;;  %v2211_v34 = vpop.f32.mrb[20].mxu0 }
 0x57b   :  { %v1158_v42 = vmax.f32 %v1150_v37, %v1154_v5  ;;  %v1146_v58 = vadd.f32 %v2211_v34, %v1018_v14  ;;  %v1140_v55 = vpop.f32.mrb[21].mxu0  ;;  %v949_v45 = vadd.f32 %v948_v43, %v947_v25 }
 0x57c   :  { %v1157_v2 = vmax.f32 %v1149_v36, %v1153_v23  ;;  %v1141_v9 = vadd.f32 %v1140_v55, %v1013_v15 }
 0x57d   :  { %v1156_v13 = vmax.f32 %v1146_v58, 0.0  ;;  %v955_v38 = vadd.f32 %v953_v56, %v949_v45 }
 0x57e   :  { %v1155_v16 = vmax.f32 %v1141_v9, 0.0  ;;  %v2339_v39 = vpack.c.bf16 %v1158_v42, %v1157_v2 }
 0x57f   :  { %v1160_v8 = vmax.f32 %v1152_v10, %v1156_v13  ;;  %v956_v41 = vmax.f32 %v955_v38, 0.0 }
 0x580   :  { %v1159_v11 = vmax.f32 %v1151_v35, %v1155_v16  ;;  %2340 = vmatprep.subr.bf16.mxu1 %v2339_v39 }
 0x581   :  { %961 = vst.msk [vmem:[#allocation2] sm:$0x1] %vm2934_vm4, %v956_v41  ;;  %2342 = vmatpush3.bf16.msra.mxu1 %v2339_v39  ;;  %v3094_v39 = vld [vmem:[#allocation17_spill] sm:$0xff] }
 0x582   :  { %v2343_v34 = vpack.c.bf16 %v1160_v8, %v1159_v11 }
 0x584   :  { %2344 = vmatprep.subr.bf16.mxu1 %v2343_v34 }
 0x585   :  { %2346 = vmatpush3.bf16.msra.mxu1 %v2343_v34 }
 0x588   :  { %2221 = vmatmul.mubr.msk.f32.vlgmr.msra.gmra.mrb[26].mxu1 %vm255_vm1, %v2597_v60 }
 0x589   :  { %2223 = vmatprep.mubr.msk.f32.mxu1 %vm255_vm1, %v2602_v61 }
 0x58c   :  { %2224 = vmatmul.mubr.msk.f32.gmra.mrb[28].mxu1 %vm255_vm1, %v2611_v62 }
 0x58d   :  { %2226 = vmatprep.mubr.msk.f32.mxu1 %vm255_vm1, %v2616_v63 }
 0x590   :  { %2227 = vmatmul.mubr.msk.f32.gmra.mrb[30].mxu1 %vm255_vm1, %v2625_v0 }
 0x591   :  { %2229 = vmatprep.mubr.msk.f32.mxu1 %vm255_vm1, %v2630_v1 }
 0x594   :  { %2230 = vmatmul.mubr.msk.f32.gmra.mrb[32].mxu1 %vm255_vm1, %v2639_v3 }
 0x595   :  { %2260 = vmatprep.mubr.msk.f32.mxu1 %vm255_vm1, %v2712_v33 }
 0x65b   :  { %v2222_v60 = vpop.f32.mrb[26].mxu1 }
 0x65c   :  { %v1291_v61 = vpop.f32.mrb[27].mxu1  ;;  %v1297_v62 = vadd.f32 %v2222_v60, %v2882_v46 }
 0x65d   :  { %v1292_v63 = vadd.f32 %v1291_v61, %v2894_v22 }
 0x65e   :  { %v1331_v15 = vmax.f32 %v1297_v62, 0.0 }
 0x65f   :  { %v2225_v42 = vpop.f32.mrb[28].mxu1  ;;  %v1330_v53 = vmax.f32 %v1292_v63, 0.0  ;;  %v3098_v63 = vld [vmem:[#allocation14_spill] sm:$0xff] }
 0x660   :  { %v1301_v23 = vpop.f32.mrb[29].mxu1  ;;  %v1307_v3 = vadd.f32 %v2225_v42, %v2902_v6  ;;  %v3097_v42 = vld [vmem:[#allocation7_spill] sm:$0xff] }
 0x661   :  { %v1302_v33 = vadd.f32 %v1301_v23, %v2886_v7  ;;  %v3092_v7 = vmov 0.0|0.0  }
 0x663   :  { %v2228_v43 = vpop.f32.mrb[30].mxu1  ;;  %v1332_v25 = vmax.f32 %v1302_v33, 0.0 }
 0x664   :  { %v1317_v0 = vadd.f32 %v2228_v43, %v2898_v49  ;;  %v1311_v14 = vpop.f32.mrb[31].mxu1  ;;  %v1333_v49 = vmax.f32 %v1307_v3, 0.0 }
 0x665   :  { %v1312_v1 = vadd.f32 %v1311_v14, %v2884_v4 }
 0x666   :  { %v1335_v5 = vmax.f32 %v1317_v0, 0.0  ;;  %v3099_v0 = vld [vmem:[#allocation19_spill] sm:$0xff] }
 0x667   :  { %v1334_v55 = vmax.f32 %v1312_v1, 0.0  ;;  %v2231_v57 = vpop.f32.mrb[32].mxu1 }
 0x668   :  { %v1339_v58 = vmax.f32 %v1331_v15, %v1335_v5  ;;  %v1327_v46 = vadd.f32 %v2231_v57, %v2906_v18  ;;  %v1321_v59 = vpop.f32.mrb[33].mxu1  ;;  %v3100_v15 = vld [vmem:[#allocation21_spill] sm:$0xff] }
 0x669   :  { %v1338_v22 = vmax.f32 %v1330_v53, %v1334_v55  ;;  %v1322_v17 = vadd.f32 %v1321_v59, %v2888_v48  ;;  %v3093_v48 = vmov 0.0   ;;  %v3101_v53 = vld [vmem:[#allocation15_spill] sm:$0xff] }
 0x66a   :  { %v1337_v24 = vmax.f32 %v1327_v46, 0.0 }
 0x66b   :  { %v1336_v4 = vmax.f32 %v1322_v17, 0.0  ;;  %v2347_v47 = vpack.c.bf16 %v1339_v58, %v1338_v22 }
 0x66c   :  { %v1341_v37 = vmax.f32 %v1333_v49, %v1337_v24  ;;  %v3102_v49 = vld [vmem:[#allocation8_spill] sm:$0xff]  ;;  %v3103_v24 = vld [vmem:[#allocation9_spill] sm:$0xff] }
 0x66d   :  { %v1340_v6 = vmax.f32 %v1332_v25, %v1336_v4  ;;  %2348 = vmatprep.subr.bf16.mxu0 %v2347_v47  ;;  %v3104_v25 = vld [vmem:[#allocation10_spill] sm:$0xff]  ;;  %v3105_v4 = vld [vmem:[#allocation11_spill] sm:$0xff] }
 0x66e   :  { %2350 = vmatpush3.bf16.msra.mxu0 %v2347_v47  ;;  %v3106_v47 = vld [vmem:[#allocation12_spill] sm:$0xff] }
 0x66f   :  { %v2351_v36 = vpack.c.bf16 %v1341_v37, %v1340_v6  ;;  %v1881_v37 = vld [vmem:[%s3049_s2] sm:$0x1]  ;;  %s2444_s2 = smov [#allocation2]  }
 0x670   :  { %1896 = vperm.xlu1 %2409, %v1881_v37   ;;  %s1908_s27 = sshll.u32 %s2444_s2, 4  ;;  %s1909_s27 = int_to_ptr.vmem [resolvable:$true] %s1908_s27 }
 0x671   :  { %2352 = vmatprep.subr.bf16.mxu0 %v2351_v36  ;;  %s2410_s28 = scalar_lea.vmem %s1909_s27, 32  ;;  %p2415_p1 = scmp.lt.s32.totalorder %s1909_s27, %s1909_s27 }
 0x672   :  { %2354 = vmatpush3.bf16.msra.mxu0 %v2351_v36  ;;  %p2411_p0 = scmp.ne.s32.totalorder %s1909_s27, %s2410_s28  ;;  %p2416_p2 = scmp.lt.s32.totalorder %s2410_s28, %s2410_s28 }
 0x673   :  { %2363 = vmatprep.subr.bf16.mxu0 %v3092_v7 }
 0x674   :  { %p2417_p3 = por %p2416_p2, %p2415_p1 }
 0x675   :  { %2241 = vmatmul.mubr.msk.f32.vlgmr.msra.gmra.mrb[22].mxu0 %vm255_vm1, %v2663_v26 }
 0x676   :  { %2243 = vmatprep.mubr.msk.f32.mxu0 %vm255_vm1, %v2668_v27  ;;  %p2418_p4 = pnand %p2417_p3, %p2411_p0 }
 0x679   :  { %2244 = vmatmul.mubr.msk.f32.gmra.mrb[24].mxu0 %vm255_vm1, %v2677_v28 }
 0x67a   :  { %2246 = vmatprep.mubr.msk.f32.mxu0 %vm255_vm1, %v2682_v29 }
 0x67d   :  { %2247 = vmatmul.mubr.msk.f32.gmra.mrb[26].mxu0 %vm255_vm1, %v2691_v30 }
 0x67e   :  { %2249 = vmatprep.mubr.msk.f32.mxu0 %vm255_vm1, %v2696_v31 }
 0x681   :  { %2250 = vmatmul.mubr.msk.f32.gmra.mrb[28].mxu0 %vm255_vm1, %v2705_v32 }
 0x682   :  { %2270 = vmatprep.mubr.msk.f32.mxu0 %vm2439_vm2, %v3093_v48 }
 0x748   :  { %v2242_v26 = vpop.f32.mrb[22].mxu0 }
 0x749   :  { %v1472_v27 = vpop.f32.mrb[23].mxu0  ;;  %v1478_v28 = vadd.f32 %v2242_v26, %v2910_v52  ;;  %v3107_v26 = vld [vmem:[#allocation16_spill] sm:$0xff] }
 0x74a   :  { %v1473_v29 = vadd.f32 %v1472_v27, %v2890_v21 }
 0x74b   :  { %v1512_v45 = vmax.f32 %v1478_v28, 0.0 }
 0x74c   :  { %v2245_v18 = vpop.f32.mrb[24].mxu0  ;;  %v1511_v9 = vmax.f32 %v1473_v29, 0.0 }
 0x74d   :  { %v1482_v44 = vpop.f32.mrb[25].mxu0  ;;  %v1488_v32 = vadd.f32 %v2245_v18, %v2900_v50 }
 0x74e   :  { %v1483_v10 = vadd.f32 %v1482_v44, %v2914_v54  ;;  %v3095_v54 = vld [vmem:[#allocation5_spill] sm:$0xff]  ;;  %v3108_v44 = vld [vmem:[#allocation22_spill] sm:$0xff] }
 0x750   :  { %v2248_v20 = vpop.f32.mrb[26].mxu0  ;;  %v1513_v11 = vmax.f32 %v1483_v10, 0.0  ;;  %v3110_v10 = vld [vmem:[#allocation20_spill] sm:$0xff] }
 0x751   :  { %v1498_v30 = vadd.f32 %v2248_v20, %v2896_v19  ;;  %v1492_v56 = vpop.f32.mrb[27].mxu0  ;;  %v1514_v19 = vmax.f32 %v1488_v32, 0.0  ;;  %v3109_v32 = vld [vmem:[#allocation18_spill] sm:$0xff] }
 0x752   :  { %v1493_v31 = vadd.f32 %v1492_v56, %v2892_v12 }
 0x753   :  { %v1516_v2 = vmax.f32 %v1498_v30, 0.0 }
 0x754   :  { %v1515_v13 = vmax.f32 %v1493_v31, 0.0  ;;  %v2251_v38 = vpop.f32.mrb[28].mxu0 }
 0x755   :  { %v1520_v35 = vmax.f32 %v1512_v45, %v1516_v2  ;;  %v1508_v52 = vadd.f32 %v2251_v38, %v2904_v51  ;;  %v1502_v16 = vpop.f32.mrb[29].mxu0  ;;  %v3096_v51 = vld [vmem:[#allocation6_spill] sm:$0xff] }
 0x756   :  { %v1519_v21 = vmax.f32 %v1511_v9, %v1515_v13  ;;  %v1503_v8 = vadd.f32 %v1502_v16, %v3094_v39  ;;  %v3111_v39 = vld [vmem:[#allocation23_spill] sm:$0xff] }
 0x757   :  { %v1518_v41 = vmax.f32 %v1508_v52, 0.0 }
 0x758   :  { %v1517_v12 = vmax.f32 %v1503_v8, 0.0  ;;  %v2355_v34 = vpack.c.bf16 %v1520_v35, %v1519_v21 }
 0x759   :  { %v1522_v60 = vmax.f32 %v1514_v19, %v1518_v41 }
 0x75a   :  { %v1521_v50 = vmax.f32 %v1513_v11, %v1517_v12  ;;  %2356 = vmatprep.subr.bf16.mxu1 %v2355_v34  ;;  %v3112_v11 = vld [vmem:[#allocation13_spill] sm:$0xff] }
 0x75b   :  { %2358 = vmatpush3.bf16.msra.mxu1 %v2355_v34 }
 0x75c   :  { %v2359_v61 = vpack.c.bf16 %v1522_v60, %v1521_v50 }
 0x75e   :  { %2360 = vmatprep.subr.bf16.mxu1 %v2359_v61 }
 0x75f   :  { %2362 = vmatpush3.bf16.msra.mxu1 %v2359_v61  ;;  %v1885_v61 = vpop.permute.xlu1 %1884 }
 0x760   :  { %2366 = vmatprep.subr.bf16.mxu1 %v3092_v7 }
 0x762   :  { %2261 = vmatmul.mubr.msk.f32.vlgmr.msra.gmra.mrb[34].mxu1 %vm255_vm1, %v3095_v54 }
 0x763   :  { %2263 = vmatprep.mubr.msk.f32.mxu1 %vm255_vm1, %v3096_v51 }
 0x766   :  { %2264 = vmatmul.mubr.msk.f32.gmra.mrb[36].mxu1 %vm255_vm1, %v3097_v42 }
 0x767   :  { %2295 = vmatprep.mubr.msk.f32.mxu1 %vm2439_vm2, %v3093_v48 }
 0x835   :  { %v2262_v23 = vpop.f32.mrb[34].mxu1 }
 0x836   :  { %v1629_v62 = vpop.f32.mrb[35].mxu1  ;;  %v1635_v43 = vadd.f32 %v2262_v23, %v3098_v63 }
 0x837   :  { %v1630_v14 = vadd.f32 %v1629_v62, %v3099_v0 }
 0x838   :  { %v1649_v55 = vmax.f32 %v1635_v43, 0.0  ;;  %v1897_v43 = vpop.permute.xlu1 %1896 }
 0x839   :  { %v2265_v1 = vpop.f32.mrb[36].mxu1  ;;  %v1648_v58 = vmax.f32 %v1630_v14, 0.0 }
 0x83a   :  { %v1645_v3 = vadd.f32 %v2265_v1, %v3100_v15  ;;  %v1639_v5 = vpop.f32.mrb[37].mxu1 }
 0x83b   :  { %v1640_v33 = vadd.f32 %v1639_v5, %v3101_v53 }
 0x83c   :  { %v1651_v57 = vmax.f32 %v1645_v3, 0.0 }
 0x83d   :  { %v1650_v46 = vmax.f32 %v1640_v33, 0.0 }
 0x83e   :  { %v1653_v59 = vmax.f32 %v1649_v55, %v1651_v57 }
 0x83f   :  { %v1652_v22 = vmax.f32 %v1648_v58, %v1650_v46 }
 0x841   :  { %v2364_v17 = vpack.c.bf16 %v1653_v59, %v1652_v22 }
 0x843   :  { %2365 = vmatpush3.bf16.msra.mxu0 %v2364_v17 }
 0x846   :  { %2271 = vmatmul.mubr.msk.f32.vlgmr.msra.gmra.mrb[30].mxu0 %vm73_vm0, %v3102_v49 }
 0x847   :  { %2273 = vmatprep.mubr.msk.f32.mxu0 %vm2439_vm2, %v3093_v48 }
 0x84a   :  { %2274 = vmatmul.mubr.msk.f32.gmra.mrb[32].mxu0 %vm73_vm0, %v3103_v24 }
 0x84b   :  { %2276 = vmatprep.mubr.msk.f32.mxu0 %vm2439_vm2, %v3093_v48 }
 0x84e   :  { %2277 = vmatmul.mubr.msk.f32.gmra.mrb[34].mxu0 %vm73_vm0, %v3104_v25 }
 0x84f   :  { %2279 = vmatprep.mubr.msk.f32.mxu0 %vm2439_vm2, %v3093_v48 }
 0x852   :  { %2280 = vmatmul.mubr.msk.f32.gmra.mrb[36].mxu0 %vm73_vm0, %v3105_v4 }
 0x853   :  { %2282 = vmatprep.mubr.msk.f32.mxu0 %vm2439_vm2, %v3093_v48 }
 0x856   :  { %2283 = vmatmul.mubr.msk.f32.gmra.mrb[38].mxu0 %vm73_vm0, %v3106_v47 }
 0x919   :  { %v1770_v6 = vpop.f32.mrb[30].mxu0 }
 0x91a   :  { %v2272_v36 = vpop.f32.mrb[31].mxu0  ;;  %v1771_v27 = vadd.f32 %v1770_v6, %v3107_v26 }
 0x91c   :  { %v1794_v20 = vmax.f32 %v1771_v27, 0.0 }
 0x91d   :  { %v1775_v18 = vpop.f32.mrb[32].mxu0 }
 0x91e   :  { %v1776_v28 = vadd.f32 %v1775_v18, %v3108_v44  ;;  %v2275_v29 = vpop.f32.mrb[33].mxu0 }
 0x920   :  { %v1795_v30 = vmax.f32 %v1776_v28, 0.0 }
 0x921   :  { %v1780_v56 = vpop.f32.mrb[34].mxu0 }
 0x922   :  { %v2367_v31 = vpack.c.bf16 %v1795_v30, %v1794_v20  ;;  %v2278_v45 = vpop.f32.mrb[35].mxu0  ;;  %v1781_v2 = vadd.f32 %v1780_v56, %v3109_v32 }
 0x924   :  { %2368 = vmatpush3.bf16.msra.mxu1 %v2367_v31  ;;  %v1796_v35 = vmax.f32 %v1781_v2, 0.0 }
 0x925   :  { %v1785_v9 = vpop.f32.mrb[36].mxu0  ;;  %2369 = vmatprep.subr.bf16.mxu1 %v3092_v7  ;;  %v3113_v7 = vld [vmem:[#allocation24_spill] sm:$0xff] }
 0x926   :  { %v1786_v13 = vadd.f32 %v1785_v9, %v3110_v10  ;;  %v2281_v38 = vpop.f32.mrb[37].mxu0 }
 0x928   :  { %v1797_v52 = vmax.f32 %v1786_v13, 0.0 }
 0x929   :  { %v1790_v16 = vpop.f32.mrb[38].mxu0 }
 0x92a   :  { %v2370_v21 = vpack.c.bf16 %v1797_v52, %v1796_v35  ;;  %v1791_v8 = vadd.f32 %v1790_v16, %v3111_v39  ;;  %v2284_v19 = vpop.f32.mrb[39].mxu0 }
 0x92c   :  { %2371 = vmatpush3.bf16.msra.mxu1 %v2370_v21  ;;  %v1798_v41 = vmax.f32 %v1791_v8, 0.0 }
 0x92d   :  { %2293 = vmatprep.subr.mxu1 %v3093_v48 }
 0x930   :  { %2294 = vmatpush3.msra.mxu1 %v1798_v41 }
 0x931   :  { %2296 = vmatmul.mubr.msk.f32.vlgmr.msra.gmra.mrb[38].mxu1 %vm861_vm3, %v3112_v11 }
 0xa04   :  { %v1875_v12 = vpop.f32.mrb[38].mxu1 }
 0xa05   :  { %v1876_v34 = vadd.f32 %v1875_v12, %v3113_v7  ;;  %v2297_v60 = vpop.f32.mrb[39].mxu1 }
 0xa07   :  { %v1879_v50 = vmax.f32 %v1876_v34, 0.0 }
 0xa09   :  { %v1887_v54 = vmul.f32 %v1885_v61, %v1879_v50 }
 0xa0b   :  { %v1888_v51 = vrot.slane %v1887_v54, 4 }
 0xa0d   :  { %v1889_v42 = vadd.f32 %v1888_v51, %v1887_v54 }
 0xa0f   :  { %v1890_v23 = vrot.slane %v1889_v42, 2 }
 0xa11   :  { %v1891_v62 = vadd.f32 %v1890_v23, %v1889_v42 }
 0xa13   :  { %v1892_v63 = vrot.slane %v1891_v62, 1 }
 0xa15   :  { %v1893_v0 = vadd.f32 %v1892_v63, %v1891_v62 }
 0xa17   :  { %v1899_v48 = vadd.f32 %v1897_v43, %v1893_v0 }
 0xa19   :  { %v1900_v14 = vmax.f32 %v1899_v48, 0.0 }
 0xa1b   :  { %1901 = vst.msk [vmem:[#allocation2 + $0x1] sm:$0x1] %vm2934_vm4, %v1900_v14 }
 0xa1c   :  { %2421 = shalt.err (!%p2418_p4)
}
 0xa1d   :  { %s2422_s4 = scalar_lea.hbm %s3050_s3, 32 }
 0xa1e   :  { %p2423_p5 = scmp.ne.s32.totalorder %s3050_s3, %s2422_s4  ;;  %p2426_p6 = scmp.lt.u32.totalorder %s2422_s4, %s3050_s3 }
 0xa20   :  { %p2428_p7 = pnand %p2426_p6, %p2423_p5 }
 0xa22   :  { %2431 = shalt.err (!%p2428_p7)
}
 0xa23   :  { %1911 = dma.vmem_to_hbm [thread:$0]  %s1909_s27, 32, %s3050_s3, [#allocation3]  }
 0xa24   :  { %2432 = dma.done.wait [#allocation3], 32  }
 0xa25   :  { %2433 = vsyncadd [#allocation3], 4294967264 }
 0xa26   :  { %1915 = vsyncpa [#allocation3], 1 }

</bundles_post_ra>
